<compile_context>
chip_gen: v7x
topology: tpu7x:2x2x1
jax: 0.10.0
libtpu: 0.0.40
codegen_flags: <defaults>
</compile_context>

<pallas_src>
import jax
import jax.numpy as jnp
from jax.experimental import pallas as pl
from jax.experimental.pallas import tpu as pltpu


# -----------------------------------------------------------------------------
# Pallas kernel: FiLM-MLP + to_rgb for one (batch, N-tile) grid step.
# All refs are in transposed layout:
#   x_ref:     (in_dim, TILE_N)   f32
#   freq_ref:  (L*H, 1)           per-channel FiLM frequency columns (compute dt)
#   fb_ref:    (L*H, 1)           folded  f*b + phase  columns        (compute dt)
#   w0t_ref:   (H, in_dim)        W0^T                                (compute dt)
#   wst_ref:   (max(L-1,1), H, H) W_l^T for hidden layers             (compute dt)
#   wrgbt_ref: (rgb, H)           W_rgb^T                             (compute dt)
#   brgb_ref:  (rgb, 1)           f32
#   o_ref:     (rgb, TILE_N)
# -----------------------------------------------------------------------------
def _inr_kernel(x_ref, freq_ref, fb_ref, w0t_ref, wst_ref, wrgbt_ref,
                brgb_ref, o_ref):
    cdt = w0t_ref.dtype                      # compute dtype (f32 or bf16)
    H = w0t_ref.shape[0]
    L = freq_ref.shape[0] // H

    # FiLM layer 0:  (H, in_dim) @ (in_dim, TILE_N) -> (H, TILE_N), f32 accum.
    x = x_ref[...].astype(cdt)
    h = jnp.dot(w0t_ref[...], x, preferred_element_type=jnp.float32)
    # FiLM mul-add + sin in the compute dtype (bf16 halves VPU/EUP work on
    # v6e/v7x; on f32 path the casts are no-ops).
    h = jnp.sin(freq_ref[0:H, :] * h.astype(cdt) + fb_ref[0:H, :])

    # FiLM layers 1..L-1 (L is static -> Python loop fully unrolls).
    for l in range(1, L):
        h = jnp.dot(wst_ref[l - 1], h, preferred_element_type=jnp.float32)
        h = jnp.sin(freq_ref[l * H:(l + 1) * H, :] * h.astype(cdt)
                    + fb_ref[l * H:(l + 1) * H, :])

    # to_rgb head: Linear + Tanh, lane-dense (rgb, TILE_N) store.
    out = jnp.tanh(
        jnp.dot(wrgbt_ref[...], h, preferred_element_type=jnp.float32)
        + brgb_ref[...].astype(jnp.float32))
    o_ref[...] = out.astype(o_ref.dtype)


def _round_up(x, m):
    return (x + m - 1) // m * m


def _cdiv(a, b):
    return -(-a // b)


def _tpu_generation():
    """Best-effort TPU generation from the device kind string (0 if unknown)."""
    try:
        kind = jax.devices()[0].device_kind.lower()
    except Exception:  # pragma: no cover - no devices / non-TPU backend
        return 0
    for g in (7, 6, 5, 4):
        if str(g) in kind:
            return g
    return 0


def _choose_tiling(n, tile_n, min_tiles=1):
    """Pick (tile, n_pad): tile <= requested, lane-aligned, padding waste
    bounded by ~128 lanes per tile (never ~tile_n)."""
    tile_n = _round_up(max(128, min(int(tile_n), 8192)), 128)
    k = max(int(min_tiles), _cdiv(n, tile_n))
    tile = _round_up(_cdiv(n, k), 128)
    return tile, k * tile


def inr_forward(x, style, params, *, tile_n=4096, mixed_precision=None,
                core_parallel=None):
    """INRNetwork.forward.

    x:      (B, N, input_dim)
    style:  (B, 2 * L * H)  == style_dict['inr_network']
    params: dict with w0 (in,H), b0 (1,H), ws (L-1,H,H), bs (L-1,H),
            w_rgb (H,rgb), b_rgb (1,rgb)
    mixed_precision: None -> auto (bf16 compute on v6e/v7x, f32 elsewhere);
                     True/False forces bf16/f32.
    core_parallel:   None -> auto (on for v7x's 2 TCs);
                     True/False forces on/off.
    returns (B, N, rgb_dim)
    """
    B, N, in_dim = x.shape
    H = params["w0"].shape[1]
    rgb = params["w_rgb"].shape[1]
    LH = style.shape[1] // 2
    L = LH // H

    gen = _tpu_generation()
    if mixed_precision is None:
        mixed_precision = gen >= 6          # bf16 VPU/EUP only on v6e/v7x
    if core_parallel is None:
        core_parallel = gen >= 7            # 2 TensorCores/chip only on v7x
    cdt = jnp.bfloat16 if mixed_precision else jnp.float32

    # get_freq_phase: rearrange 'b (n d) -> b d n', n=2; unbind(-1)
    #   -> frequencies = style[:, :L*H], phase_shifts = style[:, L*H:].
    freq = style[:, :LH] * 15.0 + 30.0                 # (B, L*H)
    phase = style[:, LH:]                              # (B, L*H)

    # Fold biases into the phase (in f32): f*(xW+b)+p == f*(xW) + (f*b + p).
    b_all = jnp.concatenate(
        [params["b0"].reshape(-1), params["bs"].reshape(-1)])   # (L*H,)
    fb = freq * b_all[None, :] + phase                          # (B, L*H)

    freq_col = freq[..., None].astype(cdt)             # (B, L*H, 1)
    fb_col = fb[..., None].astype(cdt)                 # (B, L*H, 1)

    # Pre-transposed weights: each layer becomes h' = W^T @ h on (H, TILE_N).
    w0t = params["w0"].T.astype(cdt)                   # (H, in_dim)
    if L > 1:
        wst = jnp.transpose(params["ws"], (0, 2, 1)).astype(cdt)  # (L-1, H, H)
    else:
        wst = jnp.zeros((1, H, H), cdt)                # unused dummy
    wrgbt = params["w_rgb"].T.astype(cdt)              # (rgb, H)
    brgb = params["b_rgb"].T.astype(jnp.float32)       # (rgb, 1)

    # Points-on-lanes layout + N tiling.  min_tiles=2 when core-parallel so the
    # second TensorCore actually gets grid steps.
    min_tiles = 2 if (core_parallel and N >= 256) else 1
    tile, n_pad = _choose_tiling(N, tile_n, min_tiles)
    xt = jnp.transpose(x, (0, 2, 1))                   # (B, in_dim, N)
    if n_pad != N:
        xt = jnp.pad(xt, ((0, 0), (0, 0), (0, n_pad - N)))

    grid = (B, n_pad // tile)

    # Advisory cost estimate so XLA can schedule the transpose/pad around us.
    weight_bytes = sum(int(a.size) * int(a.dtype.itemsize)
                       for a in (freq_col, fb_col, w0t, wst, wrgbt, brgb))
    cost = pl.CostEstimate(
        flops=2 * B * n_pad * (in_dim * H + (L - 1) * H * H + H * rgb),
        transcendentals=B * n_pad * (L * H + rgb),
        bytes_accessed=int(xt.size) * int(xt.dtype.itemsize)
        + 4 * B * rgb * n_pad + weight_bytes,
    )

    in_specs = [
        # x^T tile: lane axis = TILE_N (dense), sublane = in_dim.
        pl.BlockSpec((pl.Squeezed(), in_dim, tile), lambda b, n: (b, 0, n)),
        # FiLM frequency / folded-phase columns (re-fetched once per batch).
        pl.BlockSpec((pl.Squeezed(), LH, 1), lambda b, n: (b, 0, 0)),
        pl.BlockSpec((pl.Squeezed(), LH, 1), lambda b, n: (b, 0, 0)),
        # Weights: constant index maps -> stay VMEM-resident across the grid.
        pl.BlockSpec((H, in_dim), lambda b, n: (0, 0)),               # W0^T
        pl.BlockSpec((max(L - 1, 1), H, H), lambda b, n: (0, 0, 0)),  # W_l^T
        pl.BlockSpec((rgb, H), lambda b, n: (0, 0)),                  # W_rgb^T
        pl.BlockSpec((rgb, 1), lambda b, n: (0, 0)),                  # b_rgb^T
    ]
    out_spec = pl.BlockSpec((pl.Squeezed(), rgb, tile), lambda b, n: (b, 0, n))

    def run(dim_sems):
        return pl.pallas_call(
            _inr_kernel,
            out_shape=jax.ShapeDtypeStruct((B, rgb, n_pad), x.dtype),
            grid_spec=pltpu.PrefetchScalarGridSpec(
                num_scalar_prefetch=0,
                grid=grid,
                in_specs=in_specs,
                out_specs=out_spec,
            ),
            compiler_params=pltpu.CompilerParams(
                dimension_semantics=dim_sems),
            cost_estimate=cost,
        )(xt, freq_col, fb_col, w0t, wst, wrgbt, brgb)

    if core_parallel and grid[1] >= 2:
        # v7x: shard the N-tile axis across both TensorCores.  Fall back to
        # plain "parallel" if the core-parallel lowering is rejected.
        try:
            out_t = run((pltpu.PARALLEL, pltpu.CORE_PARALLEL))
        except Exception:
            out_t = run(("parallel", "parallel"))
    else:
        out_t = run(("parallel", "parallel"))

    # Back to the module's (B, num_points, rgb) layout, dropping N padding.
    return jnp.transpose(out_t[:, :, :N], (0, 2, 1))


# -----------------------------------------------------------------------------
# Pure-JAX reference (mirrors the PyTorch forward) for validation.
# -----------------------------------------------------------------------------
def inr_reference(x, style, params):
    H = params["w0"].shape[1]
    LH = style.shape[1] // 2
    L = LH // H
    freq = style[:, :LH] * 15.0 + 30.0
    phase = style[:, LH:]

    h = jnp.einsum("bnd,dh->bnh", x, params["w0"]) + params["b0"][None]
    h = jnp.sin(freq[:, None, 0:H] * h + phase[:, None, 0:H])
    for l in range(1, L):
        h = jnp.einsum("bnh,hk->bnk", h, params["ws"][l - 1]) \
            + params["bs"][l - 1][None, None, :]
        h = jnp.sin(freq[:, None, l * H:(l + 1) * H] * h
                    + phase[:, None, l * H:(l + 1) * H])
    out = jnp.tanh(jnp.einsum("bnh,hr->bnr", h, params["w_rgb"])
                   + params["b_rgb"][None])
    return out


# -----------------------------------------------------------------------------
# Deterministic parameter init (frequency_init(25)-style uniform bounds).
# -----------------------------------------------------------------------------
def init_params(key, input_dim, hidden_dim, hidden_layers, rgb_dim):
    ks = jax.random.split(key, 6)

    def freq_uniform(k, shape, fan_in):
        bound = jnp.sqrt(6.0 / fan_in) / 25.0
        return jax.random.uniform(k, shape, jnp.float32, -bound, bound)

    return {
        "w0": freq_uniform(ks[0], (input_dim, hidden_dim), input_dim),
        "b0": freq_uniform(ks[1], (1, hidden_dim), input_dim),
        "ws": freq_uniform(ks[2], (hidden_layers - 1, hidden_dim, hidden_dim),
                           hidden_dim),
        "bs": freq_uniform(ks[3], (hidden_layers - 1, hidden_dim), hidden_dim),
        "w_rgb": freq_uniform(ks[4], (hidden_dim, rgb_dim), hidden_dim),
        "b_rgb": freq_uniform(ks[5], (1, rgb_dim), hidden_dim),
    }


if __name__ == "__main__":
    # Small shapes consistent with the module's forward:
    #   input (b, num_points, 3), style (b, hidden_layers * hidden_dim * 2)
    B, N = 2, 300
    input_dim, hidden_dim, hidden_layers, rgb_dim = 3, 32, 3, 3

    key = jax.random.PRNGKey(0)
    k_x, k_s, k_p = jax.random.split(key, 3)

    x = jax.random.normal(k_x, (B, N, input_dim), dtype=jnp.float32)
    style = jax.random.normal(
        k_s, (B, hidden_layers * hidden_dim * 2), dtype=jnp.float32)
    params = init_params(k_p, input_dim, hidden_dim, hidden_layers, rgb_dim)

    ref = inr_reference(x, style, params)

    # (1) f32 path, small tile -> exercises N-tiling + remainder/pad path.
    out = jax.block_until_ready(
        inr_forward(x, style, params, tile_n=128, mixed_precision=False))
    assert out.shape == (B, N, rgb_dim), out.shape
    err = float(jnp.max(jnp.abs(out - ref)))
    assert err < 2e-4, err

    # (2) f32 path, default large tile -> single-step-per-batch path.
    out2 = jax.block_until_ready(
        inr_forward(x, style, params, mixed_precision=False))
    err2 = float(jnp.max(jnp.abs(out2 - ref)))
    assert err2 < 2e-4, err2

    # (3) Auto mixed precision (bf16 VPU/EUP path) where the hardware supports
    #     it (v6e/v7x).  Re-baselined loose tolerance: bf16 FiLM/sin of
    #     O(10)-magnitude arguments is intentionally lossy.
    if _tpu_generation() >= 6:
        out3 = jax.block_until_ready(inr_forward(x, style, params))
        assert out3.shape == (B, N, rgb_dim), out3.shape
        assert bool(jnp.all(jnp.isfinite(out3)))
        err3 = float(jnp.max(jnp.abs(out3 - ref)))
        assert err3 < 0.25, err3

    print("KERNEL_OK")
</pallas_src>

<mosaic_0001>
module attributes {stable_mosaic.version = 11 : i64} {
  func.func @_inr_kernel(%arg0: i32, %arg1: i32, %arg2: memref<1x3x128xf32, #tpu.memory_space<vmem>>, %arg3: memref<1x96x1xf32, #tpu.memory_space<vmem>>, %arg4: memref<1x96x1xf32, #tpu.memory_space<vmem>>, %arg5: memref<32x3xf32, #tpu.memory_space<vmem>>, %arg6: memref<2x32x32xf32, #tpu.memory_space<vmem>>, %arg7: memref<3x32xf32, #tpu.memory_space<vmem>>, %arg8: memref<3x1xf32, #tpu.memory_space<vmem>>, %arg9: memref<1x3x128xf32, #tpu.memory_space<vmem>>) attributes {dimension_semantics = [#tpu.dimension_semantics<parallel>, #tpu.dimension_semantics<parallel>], iteration_bounds = array<i64: 2, 3>, scalar_prefetch = 0 : i64, scratch_operands = 0 : i64, tpu.core_type = #tpu.core_type<tc>, window_params = [{transform_indices = @transform_0, window_bounds = array<i64: 1, 3, 128>}, {transform_indices = @transform_1, window_bounds = array<i64: 1, 96, 1>}, {transform_indices = @transform_2, window_bounds = array<i64: 1, 96, 1>}, {pipeline_mode = #tpu.pipeline_mode<synchronous>, transform_indices = @transform_3, window_bounds = array<i64: 32, 3>}, {pipeline_mode = #tpu.pipeline_mode<synchronous>, transform_indices = @transform_4, window_bounds = array<i64: 2, 32, 32>}, {pipeline_mode = #tpu.pipeline_mode<synchronous>, transform_indices = @transform_5, window_bounds = array<i64: 3, 32>}, {pipeline_mode = #tpu.pipeline_mode<synchronous>, transform_indices = @transform_6, window_bounds = array<i64: 3, 1>}, {transform_indices = @transform_7, window_bounds = array<i64: 1, 3, 128>}]} {
    %c0 = arith.constant 0 : index
    %c0_0 = arith.constant 0 : index
    %c0_1 = arith.constant 0 : index
    %0 = vector.load %arg2[%c0, %c0_0, %c0_1] : memref<1x3x128xf32, #tpu.memory_space<vmem>>, vector<1x3x128xf32>
    %1 = vector.shape_cast %0 : vector<1x3x128xf32> to vector<3x128xf32>
    %c0_2 = arith.constant 0 : index
    %c0_3 = arith.constant 0 : index
    %2 = vector.load %arg5[%c0_2, %c0_3] : memref<32x3xf32, #tpu.memory_space<vmem>>, vector<32x3xf32>
    %cst = arith.constant dense<0.000000e+00> : vector<32x128xf32>
    %3 = tpu.matmul %2, %1, %cst {dimension_numbers = #tpu.dot_dimension_numbers<[1], [0], [0], [1], [0, 0, 1, 1], [], []>} : vector<32x3xf32>, vector<3x128xf32>, vector<32x128xf32> -> vector<32x128xf32>
    %c0_4 = arith.constant 0 : index
    %c0_5 = arith.constant 0 : index
    %c0_6 = arith.constant 0 : index
    %4 = vector.load %arg3[%c0_4, %c0_5, %c0_6] : memref<1x96x1xf32, #tpu.memory_space<vmem>>, vector<1x32x1xf32>
    %5 = vector.shape_cast %4 : vector<1x32x1xf32> to vector<32x1xf32>
    %6 = vector.broadcast %5 : vector<32x1xf32> to vector<32x128xf32>
    %7 = arith.mulf %6, %3 : vector<32x128xf32>
    %c0_7 = arith.constant 0 : index
    %c0_8 = arith.constant 0 : index
    %c0_9 = arith.constant 0 : index
    %8 = vector.load %arg4[%c0_7, %c0_8, %c0_9] : memref<1x96x1xf32, #tpu.memory_space<vmem>>, vector<1x32x1xf32>
    %9 = vector.shape_cast %8 : vector<1x32x1xf32> to vector<32x1xf32>
    %10 = vector.broadcast %9 : vector<32x1xf32> to vector<32x128xf32>
    %11 = arith.addf %7, %10 : vector<32x128xf32>
    %12 = math.sin %11 : vector<32x128xf32>
    %c0_10 = arith.constant 0 : index
    %c0_11 = arith.constant 0 : index
    %c0_12 = arith.constant 0 : index
    %13 = vector.load %arg6[%c0_10, %c0_11, %c0_12] : memref<2x32x32xf32, #tpu.memory_space<vmem>>, vector<1x32x32xf32>
    %14 = vector.shape_cast %13 : vector<1x32x32xf32> to vector<32x32xf32>
    %cst_13 = arith.constant dense<0.000000e+00> : vector<32x128xf32>
    %15 = tpu.matmul %14, %12, %cst_13 {dimension_numbers = #tpu.dot_dimension_numbers<[1], [0], [0], [1], [0, 0, 1, 1], [], []>} : vector<32x32xf32>, vector<32x128xf32>, vector<32x128xf32> -> vector<32x128xf32>
    %c0_14 = arith.constant 0 : index
    %c32 = arith.constant 32 : index
    %c0_15 = arith.constant 0 : index
    %16 = vector.load %arg3[%c0_14, %c32, %c0_15] : memref<1x96x1xf32, #tpu.memory_space<vmem>>, vector<1x32x1xf32>
    %17 = vector.shape_cast %16 : vector<1x32x1xf32> to vector<32x1xf32>
    %18 = vector.broadcast %17 : vector<32x1xf32> to vector<32x128xf32>
    %19 = arith.mulf %18, %15 : vector<32x128xf32>
    %c0_16 = arith.constant 0 : index
    %c32_17 = arith.constant 32 : index
    %c0_18 = arith.constant 0 : index
    %20 = vector.load %arg4[%c0_16, %c32_17, %c0_18] : memref<1x96x1xf32, #tpu.memory_space<vmem>>, vector<1x32x1xf32>
    %21 = vector.shape_cast %20 : vector<1x32x1xf32> to vector<32x1xf32>
    %22 = vector.broadcast %21 : vector<32x1xf32> to vector<32x128xf32>
    %23 = arith.addf %19, %22 : vector<32x128xf32>
    %24 = math.sin %23 : vector<32x128xf32>
    %c1 = arith.constant 1 : index
    %c0_19 = arith.constant 0 : index
    %c0_20 = arith.constant 0 : index
    %25 = vector.load %arg6[%c1, %c0_19, %c0_20] : memref<2x32x32xf32, #tpu.memory_space<vmem>>, vector<1x32x32xf32>
    %26 = vector.shape_cast %25 : vector<1x32x32xf32> to vector<32x32xf32>
    %cst_21 = arith.constant dense<0.000000e+00> : vector<32x128xf32>
    %27 = tpu.matmul %26, %24, %cst_21 {dimension_numbers = #tpu.dot_dimension_numbers<[1], [0], [0], [1], [0, 0, 1, 1], [], []>} : vector<32x32xf32>, vector<32x128xf32>, vector<32x128xf32> -> vector<32x128xf32>
    %c0_22 = arith.constant 0 : index
    %c64 = arith.constant 64 : index
    %c0_23 = arith.constant 0 : index
    %28 = vector.load %arg3[%c0_22, %c64, %c0_23] : memref<1x96x1xf32, #tpu.memory_space<vmem>>, vector<1x32x1xf32>
    %29 = vector.shape_cast %28 : vector<1x32x1xf32> to vector<32x1xf32>
    %30 = vector.broadcast %29 : vector<32x1xf32> to vector<32x128xf32>
    %31 = arith.mulf %30, %27 : vector<32x128xf32>
    %c0_24 = arith.constant 0 : index
    %c64_25 = arith.constant 64 : index
    %c0_26 = arith.constant 0 : index
    %32 = vector.load %arg4[%c0_24, %c64_25, %c0_26] : memref<1x96x1xf32, #tpu.memory_space<vmem>>, vector<1x32x1xf32>
    %33 = vector.shape_cast %32 : vector<1x32x1xf32> to vector<32x1xf32>
    %34 = vector.broadcast %33 : vector<32x1xf32> to vector<32x128xf32>
    %35 = arith.addf %31, %34 : vector<32x128xf32>
    %36 = math.sin %35 : vector<32x128xf32>
    %c0_27 = arith.constant 0 : index
    %c0_28 = arith.constant 0 : index
    %37 = vector.load %arg7[%c0_27, %c0_28] : memref<3x32xf32, #tpu.memory_space<vmem>>, vector<3x32xf32>
    %cst_29 = arith.constant dense<0.000000e+00> : vector<3x128xf32>
    %38 = tpu.matmul %37, %36, %cst_29 {dimension_numbers = #tpu.dot_dimension_numbers<[1], [0], [0], [1], [0, 0, 1, 1], [], []>} : vector<3x32xf32>, vector<32x128xf32>, vector<3x128xf32> -> vector<3x128xf32>
    %c0_30 = arith.constant 0 : index
    %c0_31 = arith.constant 0 : index
    %39 = vector.load %arg8[%c0_30, %c0_31] : memref<3x1xf32, #tpu.memory_space<vmem>>, vector<3x1xf32>
    %40 = vector.broadcast %39 : vector<3x1xf32> to vector<3x128xf32>
    %41 = arith.addf %38, %40 : vector<3x128xf32>
    %42 = math.tanh %41 : vector<3x128xf32>
    %c0_32 = arith.constant 0 : index
    %c0_33 = arith.constant 0 : index
    %c0_34 = arith.constant 0 : index
    %43 = vector.load %arg9[%c0_32, %c0_33, %c0_34] : memref<1x3x128xf32, #tpu.memory_space<vmem>>, vector<1x3x128xf32>
    %44 = vector.shape_cast %43 : vector<1x3x128xf32> to vector<3x128xf32>
    %45 = vector.shape_cast %42 : vector<3x128xf32> to vector<1x3x128xf32>
    tpu.vector_store %arg9[%c0_32, %c0_33, %c0_34], %45 {strides = array<i32>} : memref<1x3x128xf32, #tpu.memory_space<vmem>>, vector<1x3x128xf32>,
    return
  }
  func.func @transform_0(%arg0: i32, %arg1: i32) -> (i32, i32, i32) {
    %c0_i32 = arith.constant 0 : i32
    %c0_i32_0 = arith.constant 0 : i32
    return %arg0, %c0_i32, %arg1 : i32, i32, i32
  }
  func.func @transform_1(%arg0: i32, %arg1: i32) -> (i32, i32, i32) {
    %c0_i32 = arith.constant 0 : i32
    %c0_i32_0 = arith.constant 0 : i32
    %c0_i32_1 = arith.constant 0 : i32
    return %arg0, %c0_i32, %c0_i32_0 : i32, i32, i32
  }
  func.func @transform_2(%arg0: i32, %arg1: i32) -> (i32, i32, i32) {
    %c0_i32 = arith.constant 0 : i32
    %c0_i32_0 = arith.constant 0 : i32
    %c0_i32_1 = arith.constant 0 : i32
    return %arg0, %c0_i32, %c0_i32_0 : i32, i32, i32
  }
  func.func @transform_3(%arg0: i32, %arg1: i32) -> (i32, i32) {
    %c0_i32 = arith.constant 0 : i32
    %c0_i32_0 = arith.constant 0 : i32
    %c0_i32_1 = arith.constant 0 : i32
    return %c0_i32, %c0_i32_0 : i32, i32
  }
  func.func @transform_4(%arg0: i32, %arg1: i32) -> (i32, i32, i32) {
    %c0_i32 = arith.constant 0 : i32
    %c0_i32_0 = arith.constant 0 : i32
    %c0_i32_1 = arith.constant 0 : i32
    %c0_i32_2 = arith.constant 0 : i32
    return %c0_i32, %c0_i32_0, %c0_i32_1 : i32, i32, i32
  }
  func.func @transform_5(%arg0: i32, %arg1: i32) -> (i32, i32) {
    %c0_i32 = arith.constant 0 : i32
    %c0_i32_0 = arith.constant 0 : i32
    %c0_i32_1 = arith.constant 0 : i32
    return %c0_i32, %c0_i32_0 : i32, i32
  }
  func.func @transform_6(%arg0: i32, %arg1: i32) -> (i32, i32) {
    %c0_i32 = arith.constant 0 : i32
    %c0_i32_0 = arith.constant 0 : i32
    %c0_i32_1 = arith.constant 0 : i32
    return %c0_i32, %c0_i32_0 : i32, i32
  }
  func.func @transform_7(%arg0: i32, %arg1: i32) -> (i32, i32, i32) {
    %c0_i32 = arith.constant 0 : i32
    %c0_i32_0 = arith.constant 0 : i32
    return %arg0, %c0_i32, %arg1 : i32, i32, i32
  }
}

</mosaic_0001>

<bundles_post_ra>
// kernel: tpu_custom_call.1
= control target key start
LH: loop header
LB: loop body
LE: loop exit
PB: predicated region body
PF: predicated region fallthrough
CT: control target
= control target key end

     0   :  { %s2683_s24 = smov 0   ;;  %s2685_s25 = smov 0   ;;  %s3748_s0 = inlined_call_operand.vmem [shape: f32[2,3,384], index: 0, kind: input, shape index: {}]   ;;  %s3749_s1 = inlined_call_operand.vmem [shape: f32[2,96,1], index: 1, kind: input, shape index: {}]   ;;  %s3750_s2 = inlined_call_operand.vmem [shape: f32[2,96,1], index: 2, kind: input, shape index: {}]   ;;  %s3751_s3 = inlined_call_operand.vmem [shape: f32[32,3], index: 3, kind: input, shape index: {}]   ;;  %s3752_s4 = inlined_call_operand.vmem [shape: f32[2,32,32], index: 4, kind: input, shape index: {}]   ;;  %s3753_s5 = inlined_call_operand.vmem [shape: f32[3,32], index: 5, kind: input, shape index: {}]   ;;  %s3754_s6 = inlined_call_operand.vmem [shape: f32[3,1], index: 6, kind: input, shape index: {}]   ;;  %s3755_s7 = inlined_call_operand.vmem [shape: f32[2,3,384], index: 7, kind: output, shape index: {}]  }
   0x1   :  { %s2687_s26 = smov 0   ;;  %s2689_s27 = smov 0  }
   0x2   :  { %s2691_s28 = smov 0  }
   0x3 LB: > { %s26_s29 = sadd.s32 1, %s2623_s26  ;;  %s29_s30 = sadd.s32 1, %s2627_s27  ;;  %s2631_s28 = sphi %s2691_s28, %s17_s28   ;;  %s2627_s27 = sphi %s2689_s27, %s3777_s27   ;;  %s2623_s26 = sphi %s2687_s26, %s3776_s26   ;;  %s2619_s25 = sphi %s2685_s25, %s3775_s25   ;;  %s2615_s24 = sphi %s2683_s24, %s3774_s24  }
   0x4   : > { %p27_p0 = scmp.ge.s32.totalorder %s26_s29, 3  ;;  %p2273_p1 = scmp.ge.s32.totalorder %s2631_s28, 1 }
   0x5   : > { %p276_p2 = scmp.lt.s32.totalorder %s2631_s28, 7 }
   0x6   : > { %s3779_s29 = smov (%p27_p0, %s26_s29), 0  ;;  %s3781_s30 = smov (!%p27_p0, %s29_s30), %s2627_s27 }
   0x7   : > { %p277_p3 = pnand %p2273_p1, %p276_p2  ;;  %p31_p4 = scmp.ge.s32.totalorder %s3781_s30, 2 }
   0x8   : > { %p324_p5 = scmp.lt.s32.totalorder (!%p277_p3), %s2619_s25, 1  ;;  %p326_p6 = scmp.lt.s32.totalorder (!%p277_p3), %s2615_s24, 2  ;;  %v351_v0 = vld [vmem:[%s3751_s3] sm:$0xff] (!%p277_p3)  ;;  %vm355_vm0 = vcmask (!%p277_p3), 23552   ;;  %v2633_v1 = vmov (!%p277_p3), 0   ;;  %vm368_vm1 = vcmask (!%p277_p3), 1042432  }
   0x9   : > { %s3783_s30 = smov (%p31_p4, %s3781_s30), 0  ;;  %280 = sbr.rel (%p277_p3) target bundleno = 1301 (0x515), region = 48 }
   0xa   : > { %2374 = vmatprep.mubr.msk.f32.mxu0 (!%p277_p3), %vm355_vm0, %v351_v0  ;;  %2541 = vset.pattern.permute.xlu0 (!%p277_p3), %v2633_v1  ;;  %v352_v4 = vld [vmem:[%s3751_s3 + $0x8] sm:$0xff] (!%p277_p3)  ;;  %v353_v6 = vld [vmem:[%s3751_s3 + $0x10] sm:$0xff] (!%p277_p3)  ;;  %v354_v9 = vld [vmem:[%s3751_s3 + $0x18] sm:$0xff] (!%p277_p3) }
   0xb   : > { %2542 = vset.pattern.permute.xlu1 (!%p277_p3), %v2633_v1  ;;  %v2078_v30 = vld [vmem:[%s3754_s6] sm:$0x7] (!%p277_p3) }
  0x10   : > { %s3785_s25 = smov (!%p324_p5, %s2619_s25), 1  ;;  %s3787_s24 = smov (!%p326_p6, %s2615_s24), 2 }
  0x11   : > { %s2441_s10 = smul.u32 3, %s3785_s25 }
  0x12   : > { %s2442_s11 = smul.u32 96, %s3785_s25 }
  0x13   : > { %s2717_s12 = sadd.s32 %s2441_s10, %s3787_s24 }
  0x14   : > { %s2274_s13 = sshll.u32 %s2717_s12, 2  ;;  %s2723_s16 = scalar_lea.vmem %s3749_s1, %s2442_s11 }
  0x15   : > { %s331_s19 = scalar_lea.vmem %s3748_s0, %s2274_s13  ;;  %s2733_s22 = scalar_lea.vmem %s3750_s2, %s2442_s11  ;;  %v457_v2 = vld [vmem:[%s2723_s16] sm:$0xff]  ;;  %v458_v7 = vld [vmem:[%s2723_s16 + $0x8] sm:$0xff]  ;;  %v459_v10 = vld [vmem:[%s2723_s16 + $0x10] sm:$0xff] }
  0x16   : > { %v350_v3 = vld [vmem:[%s331_s19] sm:$0x7]  ;;  %463 = vperm.xlu0 %2541, %v457_v2   ;;  %v486_v8 = vld [vmem:[%s2733_s22 + $0x8] sm:$0xff]  ;;  %v460_v11 = vld [vmem:[%s2723_s16 + $0x18] sm:$0xff]  ;;  %s349_s19 = scalar_lea.vmem %s3755_s7, %s2274_s13 }
  0x17   : > { %v485_v5 = vld [vmem:[%s2733_s22] sm:$0xff]  ;;  %2372 = vmatprep.subr.msk.mxu0 %vm368_vm1, %v350_v3  ;;  %v487_v12 = vld [vmem:[%s2733_s22 + $0x10] sm:$0xff]  ;;  %v488_v13 = vld [vmem:[%s2733_s22 + $0x18] sm:$0xff] }
  0x18   : > { %491 = vperm.xlu1 %2542, %v485_v5   ;;  %2373 = vmatpush3.msk.msra.mxu0 %vm368_vm1, %v350_v3  ;;  %v1031_v14 = vld [vmem:[%s2723_s16 + $0x20] sm:$0xff]  ;;  %v1032_v15 = vld [vmem:[%s2723_s16 + $0x28] sm:$0xff]  ;;  %v1033_v18 = vld [vmem:[%s2723_s16 + $0x30] sm:$0xff] }
  0x19   : > { %2375 = vmatmul.mubr.msk.f32.vlgmr.msra.gmra.mrb[0].mxu0 %vm355_vm0, %v352_v4  ;;  %v1059_v16 = vld [vmem:[%s2733_s22 + $0x20] sm:$0xff]  ;;  %v1060_v17 = vld [vmem:[%s2733_s22 + $0x28] sm:$0xff]  ;;  %v1034_v19 = vld [vmem:[%s2723_s16 + $0x38] sm:$0xff] }
  0x1a   : > { %2377 = vmatprep.mubr.msk.f32.mxu0 %vm355_vm0, %v353_v6  ;;  %468 = vperm.xlu0 %2541, %v458_v7   ;;  %v1061_v20 = vld [vmem:[%s2733_s22 + $0x30] sm:$0xff]  ;;  %v1062_v21 = vld [vmem:[%s2733_s22 + $0x38] sm:$0xff]  ;;  %v1605_v22 = vld [vmem:[%s2723_s16 + $0x40] sm:$0xff] }
  0x1b   : > { %v1606_v23 = vld [vmem:[%s2723_s16 + $0x48] sm:$0xff]  ;;  %v1633_v24 = vld [vmem:[%s2733_s22 + $0x40] sm:$0xff]  ;;  %v1607_v26 = vld [vmem:[%s2723_s16 + $0x50] sm:$0xff] }
  0x1c   : > { %496 = vperm.xlu1 %2542, %v486_v8   ;;  %v1634_v25 = vld [vmem:[%s2733_s22 + $0x48] sm:$0xff]  ;;  %v1608_v27 = vld [vmem:[%s2723_s16 + $0x58] sm:$0xff]  ;;  %v1635_v28 = vld [vmem:[%s2733_s22 + $0x50] sm:$0xff] }
  0x1d   : > { %2378 = vmatmul.mubr.msk.f32.gmra.mrb[2].mxu0 %vm355_vm0, %v354_v9  ;;  %v1636_v29 = vld [vmem:[%s2733_s22 + $0x58] sm:$0xff] }
  0x1e   : > { %473 = vperm.xlu0 %2541, %v459_v10  }
  0x20   : > { %478 = vperm.xlu1 %2542, %v460_v11  }
  0x22   : > { %501 = vperm.xlu0 %2541, %v487_v12  }
  0x24   : > { %506 = vperm.xlu1 %2542, %v488_v13  }
  0x26   : > { %1037 = vperm.xlu0 %2541, %v1031_v14  }
  0x28   : > { %1042 = vperm.xlu1 %2542, %v1032_v15  }
  0x2a   : > { %1065 = vperm.xlu0 %2541, %v1059_v16  }
  0x2c   : > { %1070 = vperm.xlu1 %2542, %v1060_v17  }
  0x2e   : > { %1047 = vperm.xlu0 %2541, %v1033_v18  }
  0x30   : > { %1052 = vperm.xlu1 %2542, %v1034_v19  }
  0x32   : > { %1075 = vperm.xlu0 %2541, %v1061_v20  }
  0x34   : > { %1080 = vperm.xlu1 %2542, %v1062_v21  }
  0x36   : > { %1611 = vperm.xlu0 %2541, %v1605_v22   ;;  %v2634_v22 = vmov 2102212464  }
  0x38   : > { %1616 = vperm.xlu1 %2542, %v1606_v23  }
  0x3a   : > { %1639 = vperm.xlu0 %2541, %v1633_v24  }
  0x3c   : > { %1644 = vperm.xlu1 %2542, %v1634_v25  }
  0x3e   : > { %1621 = vperm.xlu0 %2541, %v1607_v26  }
  0x40   : > { %1626 = vperm.xlu1 %2542, %v1608_v27   ;;  %v2635_v27 = vmov 920167782  }
  0x42   : > { %1649 = vperm.xlu0 %2541, %v1635_v28  }
  0x44   : > { %1654 = vperm.xlu1 %2542, %v1636_v29  }
  0x46   : > { %2081 = vperm.xlu0 %2541, %v2078_v30  }
  0x95   : > { %v464_v32 = vpop.permute.xlu0 %463 }
  0x97   : > { %v492_v31 = vpop.permute.xlu1 %491 }
  0x99   : > { %v469_v34 = vpop.permute.xlu0 %468 }
  0x9b   : > { %v497_v33 = vpop.permute.xlu1 %496 }
  0x9d   : > { %v474_v37 = vpop.permute.xlu0 %473 }
  0x9f   : > { %v479_v35 = vpop.permute.xlu1 %478 }
  0xa1   : > { %v502_v50 = vpop.permute.xlu0 %501 }
  0xa3   : > { %v507_v47 = vpop.permute.xlu1 %506 }
  0xec   : > { %v2376_v36 = vpop.f32.mrb[0].mxu0 }
  0xed   : > { %v482_v38 = vmul.f32 %v2376_v36, %v469_v34  ;;  %v438_v39 = vpop.f32.mrb[1].mxu0 }
  0xee   : > { %v481_v40 = vmul.f32 %v464_v32, %v438_v39  ;;  %v2636_v32 = vmov 1326507024   ;;  %v2638_v39 = vmov 2475754826  }
  0xef   : > { %v2774_v41 = vadd.f32 %v497_v33, %v482_v38 }
  0xf0   : > { %v2776_v42 = vadd.f32 %v492_v31, %v481_v40  ;;  %v2379_v43 = vpop.f32.mrb[2].mxu0 }
  0xf1   : > { %v620_v44 = vand.u32 2139095040, %v2774_v41  ;;  %v484_v45 = vmul.f32 %v2379_v43, %v479_v35  ;;  %v448_v46 = vpop.f32.mrb[3].mxu0  ;;  %v617_v17 = vand.u32 2147483647, %v2774_v41  ;;  %v2639_v43 = vmov 2131351028  }
  0xf2   : > { %v516_v48 = vand.u32 2139095040, %v2776_v42  ;;  %v483_v49 = vmul.f32 %v474_v37, %v448_v46  ;;  %v513_v55 = vand.u32 2147483647, %v2776_v42  ;;  %v2637_v37 = vmov 683565275  }
  0xf3   : > { %v621_v51 = vshrl.u32 %v620_v44, 23  ;;  %v2780_v52 = vadd.f32 %v507_v47, %v484_v45 }
  0xf4   : > { %v517_v53 = vshrl.u32 %v516_v48, 23  ;;  %v2782_v54 = vadd.f32 %v502_v50, %v483_v49  ;;  %v520_v2 = vand.u32 8388607, %v513_v55 }
  0xf5   : > { %v2287_v56 = vadd.s32 4294967169, %v621_v51  ;;  %v825_v57 = vand.u32 2147483647, %v2780_v52  ;;  %v828_v58 = vand.u32 2139095040, %v2780_v52 }
  0xf6   : > { %v2283_v59 = vadd.s32 4294967169, %v517_v53  ;;  %v724_v60 = vand.u32 2139095040, %v2782_v54  ;;  %v721_v0 = vand.u32 2147483647, %v2782_v54  ;;  %v521_v13 = vor.u32 8388608, %v520_v2 }
  0xf7   : > { %v627_v61 = vadd.s32 1, %v2287_v56  ;;  %v829_v62 = vshrl.u32 %v828_v58, 23  ;;  %v832_v4 = vand.u32 8388607, %v825_v57 }
  0xf8   : > { %v523_v63 = vadd.s32 1, %v2283_v59  ;;  %v725_v1 = vshrl.u32 %v724_v60, 23  ;;  %v2802_v11 = vand.u32 8388607, %v721_v0  ;;  %v2812_v21 = vshll.u32 %v521_v13, 8 }
  0xf9   : > { %vm628_vm2 = vcmp.gt.s32.totalorder %v627_v61, 0  ;;  %v2295_v3 = vadd.s32 4294967169, %v829_v62  ;;  %v833_v14 = vor.u32 8388608, %v832_v4 }
  0xfa   : > { %v2793_v5 = vsel %vm628_vm2, %v627_v61, 0  ;;  %vm524_vm3 = vcmp.gt.s32.totalorder %v523_v63, 0  ;;  %v2291_v6 = vadd.s32 4294967169, %v725_v1  ;;  %v729_v19 = vor.u32 8388608, %v2802_v11 }
  0xfb   : > { %v2796_v7 = vand.u32 31, %v2793_v5  ;;  %v525_v8 = vsel %vm524_vm3, %v523_v63, 0  ;;  %v835_v9 = vadd.s32 1, %v2295_v3  ;;  %v2820_v26 = vshll.u32 %v833_v14, 8 }
  0xfc   : > { %v2798_v10 = vand.u32 31, %v525_v8  ;;  %v731_v12 = vadd.s32 1, %v2291_v6  ;;  %v2818_v24 = vshrl.u32 %v525_v8, 5 }
  0xfd   : > { %v2805_v15 = vsub.s32 32, %v2796_v7  ;;  %vm836_vm4 = vcmp.gt.s32.totalorder %v835_v9, 0  ;;  %v2816_v23 = vshll.u32 %v2634_v22, %v2796_v7 }
  0xfe   : > { %v2808_v16 = vsub.s32 32, %v2798_v10  ;;  %vm732_vm5 = vcmp.gt.s32.totalorder %v731_v12, 0  ;;  %v837_v18 = vsel %vm836_vm4, %v835_v9, 0  ;;  %v539_v29 = vshll.u32 %v2634_v22, %v2798_v10 }
  0xff   : > { %v733_v20 = vsel %vm732_vm5, %v731_v12, 0  ;;  %v839_v25 = vand.u32 31, %v837_v18  ;;  %v2824_v28 = vshrl.u32 %v2635_v27, %v2805_v15  ;;  %v2832_v31 = vshll.u32 %v2635_v27, %v2798_v10 }
 0x100   : > { %v540_v30 = vshrl.u32 %v2635_v27, %v2808_v16  ;;  %v2836_v33 = vshrl.u32 %v2636_v32, %v2808_v16  ;;  %v838_v34 = vshrl.u32 %v837_v18, 5  ;;  %v2838_v36 = vshrl.u32 %v733_v20, 5 }
 0x101   : > { %v840_v35 = vsub.s32 32, %v839_v25  ;;  %v842_v38 = vshll.u32 %v2637_v37, %v839_v25  ;;  %v845_v40 = vshll.u32 %v2638_v39, %v839_v25  ;;  %v848_v44 = vshll.u32 %v2639_v43, %v839_v25 }
 0x102   : > { %v735_v45 = vand.u32 31, %v733_v20  ;;  %v851_v50 = vshll.u32 %v2634_v22, %v839_v25  ;;  %v854_v53 = vshll.u32 %v2635_v27, %v839_v25  ;;  %vm857_vm6 = vcmp.lt.s32.totalorder %v838_v34, 1 }
 0x103   : > { %v841_v46 = vshrl.u32 %v2637_v37, %v840_v35  ;;  %v843_v47 = vshrl.u32 %v2638_v39, %v840_v35  ;;  %v846_v48 = vshrl.u32 %v2639_v43, %v840_v35  ;;  %v849_v49 = vshrl.u32 %v2634_v22, %v840_v35 }
 0x104   : > { %v852_v51 = vshrl.u32 %v2635_v27, %v840_v35  ;;  %v855_v56 = vshrl.u32 %v2636_v32, %v840_v35  ;;  %vm858_vm7 = vcmp.lt.s32.totalorder %v838_v34, 2  ;;  %vm859_vm8 = vcmp.lt.s32.totalorder %v838_v34, 3 }
 0x105   : > { %v844_v58 = vor.u32 %v843_v47, %v842_v38  ;;  %v847_v59 = vor.u32 %v846_v48, %v845_v40  ;;  %v850_v60 = vor.u32 %v849_v49, %v848_v44  ;;  %vm860_vm9 = vcmp.lt.s32.totalorder %v838_v34, 4 }
 0x106   : > { %v853_v61 = vor.u32 %v852_v51, %v851_v50  ;;  %v856_v62 = vor.u32 %v855_v56, %v854_v53  ;;  %v2851_v3 = vor.u32 %v540_v30, %v539_v29  ;;  %v736_v14 = vsub.s32 32, %v735_v45 }
 0x107   : > { %v861_v63 = vsel %vm857_vm6, %v841_v46, %v844_v58  ;;  %v865_v1 = vsel %vm857_vm6, %v844_v58, %v847_v59  ;;  %v869_v2 = vsel %vm857_vm6, %v847_v59, %v850_v60  ;;  %v862_v4 = vsel %vm860_vm9, %v850_v60, 2102212464 }
 0x108   : > { %v866_v6 = vsel %vm860_vm9, %v853_v61, 920167782  ;;  %v870_v8 = vsel %vm860_vm9, %v856_v62, 1326507024  ;;  %v863_v9 = vsel %vm859_vm8, %v847_v59, %v862_v4  ;;  %v738_v35 = vshll.u32 %v2637_v37, %v735_v45 }
 0x109   : > { %v867_v12 = vsel %vm859_vm8, %v850_v60, %v866_v6  ;;  %v871_v13 = vsel %vm859_vm8, %v853_v61, %v870_v8  ;;  %v864_v18 = vsel %vm858_vm7, %v861_v63, %v863_v9  ;;  %v739_v46 = vshrl.u32 %v2638_v39, %v736_v14 }
 0x10a   : > { %v868_v20 = vsel %vm858_vm7, %v865_v1, %v867_v12  ;;  %v872_v25 = vsel %vm858_vm7, %v869_v2, %v871_v13  ;;  %v880_v44 = vmul.u32 %v2820_v26, %v864_v18  ;;  %v741_v47 = vshll.u32 %v2638_v39, %v735_v45 }
 0x10b   : > { %v2858_v38 = vmul.u32.u64.low %v2820_v26, %v872_v25  ;;  %v2859_v40 = vmul.u32.u64.high %v2820_v26, %v872_v25, %v2858_v38  ;;  %v2862_v29 = vmul.u32.u64.low %v2820_v26, %v868_v20  ;;  %v2863_v30 = vmul.u32.u64.high %v2820_v26, %v868_v20, %v2862_v29 }
 0x10c   : > { %v742_v34 = vshrl.u32 %v2639_v43, %v736_v14  ;;  %v744_v48 = vshll.u32 %v2639_v43, %v735_v45  ;;  %v745_v49 = vshrl.u32 %v2634_v22, %v736_v14  ;;  %v747_v50 = vshll.u32 %v2634_v22, %v735_v45 }
 0x10d   : > { %v748_v51 = vshrl.u32 %v2635_v27, %v736_v14  ;;  %v740_v53 = vor.u32 %v739_v46, %v738_v35  ;;  %v750_v58 = vshll.u32 %v2635_v27, %v735_v45  ;;  %v751_v26 = vshrl.u32 %v2636_v32, %v736_v14 }
 0x10e   : > { %v743_v56 = vor.u32 %v742_v34, %v741_v47  ;;  %vm548_vm10 = vcmp.lt.s32.totalorder %v2818_v24, 4  ;;  %vm882_vm11 = vc.u32 %v2859_v40, %v2862_v29  ;;  %v883_v59 = vadd.s32 1, %v2863_v30 }
 0x10f   : > { %v737_v60 = vshrl.u32 %v2637_v37, %v736_v14  ;;  %v746_v61 = vor.u32 %v745_v49, %v744_v48  ;;  %v749_v62 = vor.u32 %v748_v51, %v747_v50  ;;  %v752_v63 = vor.u32 %v751_v26, %v750_v58 }
 0x110   : > { %vm753_vm12 = vcmp.lt.s32.totalorder %v2838_v36, 1  ;;  %vm754_vm13 = vcmp.lt.s32.totalorder %v2838_v36, 2  ;;  %v884_v45 = vsel %vm882_vm11, %v883_v59, %v2863_v30  ;;  %vm755_vm14 = vcmp.lt.s32.totalorder %v2838_v36, 3 }
 0x111   : > { %vm756_vm15 = vcmp.lt.s32.totalorder %v2838_v36, 4  ;;  %v757_v1 = vsel %vm753_vm12, %v737_v60, %v740_v53  ;;  %v885_v2 = vadd.s32 %v884_v45, %v880_v44  ;;  %v761_v6 = vsel %vm753_vm12, %v740_v53, %v743_v56 }
 0x112   : > { %v758_v4 = vsel %vm756_vm15, %v746_v61, 2102212464  ;;  %v762_v8 = vsel %vm756_vm15, %v749_v62, 920167782  ;;  %v765_v13 = vsel %vm753_vm12, %v743_v56, %v746_v61  ;;  %v766_v14 = vsel %vm756_vm15, %v752_v63, 1326507024 }
 0x113   : > { %v759_v9 = vsel %vm755_vm14, %v743_v56, %v758_v4  ;;  %v763_v12 = vsel %vm755_vm14, %v746_v61, %v762_v8  ;;  %v544_v18 = vor.u32 %v2836_v33, %v2832_v31  ;;  %v886_v20 = vadd.s32 536870912, %v885_v2 }
 0x114   : > { %v764_v25 = vsel %vm754_vm13, %v761_v6, %v763_v12  ;;  %v767_v35 = vsel %vm755_vm14, %v749_v62, %v766_v14  ;;  %v760_v38 = vsel %vm754_vm13, %v757_v1, %v759_v9  ;;  %v769_v44 = vshll.u32 %v729_v19, 8 }
 0x115   : > { %v768_v30 = vsel %vm754_vm13, %v765_v13, %v767_v35  ;;  %v530_v46 = vshll.u32 %v2637_v37, %v2798_v10  ;;  %v2898_v47 = vshrl.u32 %v886_v20, 30  ;;  %v531_v31 = vshrl.u32 %v2638_v39, %v2808_v16 }
 0x116   : > { %v533_v33 = vshll.u32 %v2638_v39, %v2798_v10  ;;  %v534_v34 = vshrl.u32 %v2639_v43, %v2808_v16  ;;  %v2906_v48 = vmul.u32.u64.low %v769_v44, %v768_v30  ;;  %v2907_v36 = vmul.u32.u64.high %v769_v44, %v768_v30, %v2906_v48 }
 0x117   : > { %v2909_v49 = vmul.u32.u64.low %v769_v44, %v764_v25  ;;  %v2910_v11 = vmul.u32.u64.high %v769_v44, %v764_v25, %v2909_v49  ;;  %v554_v19 = vsel %vm548_vm10, %v2851_v3, 920167782  ;;  %v888_v50 = vshll.u32 %v2898_v47, 30 }
 0x118   : > { %v532_v51 = vor.u32 %v531_v31, %v530_v46  ;;  %v535_v53 = vor.u32 %v534_v34, %v533_v33  ;;  %v558_v56 = vsel %vm548_vm10, %v544_v18, 1326507024  ;;  %v529_v58 = vshrl.u32 %v2637_v37, %v2808_v16 }
 0x119   : > { %v536_v26 = vshll.u32 %v2639_v43, %v2798_v10  ;;  %v537_v59 = vshrl.u32 %v2634_v22, %v2808_v16  ;;  %v2925_v60 = vsub.s32 %v885_v2, %v888_v50  ;;  %v776_v61 = vmul.u32 %v769_v44, %v760_v38 }
 0x11a   : > { %vm545_vm0 = vcmp.lt.s32.totalorder %v2818_v24, 1  ;;  %vm547_vm1 = vcmp.lt.s32.totalorder %v2818_v24, 3  ;;  %vm778_vm2 = vc.u32 %v2907_v36, %v2909_v49  ;;  %v779_v62 = vadd.s32 1, %v2910_v11 }
 0x11b   : > { %v538_v63 = vor.u32 %v537_v59, %v536_v26  ;;  %v553_v45 = vsel %vm545_vm0, %v532_v51, %v535_v53  ;;  %v891_v1 = vsub.s32 0, %v2925_v60  ;;  %vm546_vm3 = vcmp.lt.s32.totalorder %v2818_v24, 2 }
 0x11c   : > { %v549_v10 = vsel %vm545_vm0, %v529_v58, %v532_v51  ;;  %v559_v16 = vsel %vm547_vm1, %v2851_v3, %v558_v56  ;;  %v780_v2 = vsel %vm778_vm2, %v779_v62, %v2910_v11  ;;  %v647_v18 = vshrl.u32 %v2636_v32, %v2805_v15 }
 0x11d   : > { %v550_v4 = vsel %vm548_vm10, %v538_v63, 2102212464  ;;  %v555_v6 = vsel %vm547_vm1, %v538_v63, %v554_v19  ;;  %v557_v8 = vsel %vm545_vm0, %v535_v53, %v538_v63  ;;  %v2296_v9 = vmin.u32 %v891_v1, %v2925_v60 }
 0x11e   : > { %v781_v12 = vadd.s32 %v780_v2, %v776_v61  ;;  %v551_v13 = vsel %vm547_vm1, %v535_v53, %v550_v4  ;;  %v556_v14 = vsel %vm546_vm3, %v553_v45, %v555_v6  ;;  %v560_v3 = vsel %vm546_vm3, %v557_v8, %v559_v16 }
 0x11f   : > { %v2946_v20 = vmul.u32.u64.low %v2812_v21, %v556_v14  ;;  %v2947_v25 = vmul.u32.u64.high %v2812_v21, %v556_v14, %v2946_v20  ;;  %v893_v35 = vclz %v2296_v9  ;;  %v552_v46 = vsel %vm546_vm3, %v549_v10, %v551_v13 }
 0x120   : > { %v782_v38 = vadd.s32 536870912, %v781_v12  ;;  %v2951_v30 = vmul.u32.u64.low %v2812_v21, %v560_v3  ;;  %v2952_v44 = vmul.u32.u64.high %v2812_v21, %v560_v3, %v2951_v30  ;;  %v624_v31 = vand.u32 8388607, %v617_v17 }
 0x121   : > { %v2959_v33 = vshrl.u32 %v2793_v5, 5  ;;  %v645_v34 = vor.u32 %v2824_v28, %v2816_v23  ;;  %v646_v48 = vshll.u32 %v2635_v27, %v2796_v7  ;;  %v2297_v19 = vadd.s32 4294967294, %v893_v35 }
 0x122   : > { %v2965_v11 = vshrl.u32 %v782_v38, 30  ;;  %v571_v50 = vadd.s32 1, %v2947_v25  ;;  %v638_v24 = vshrl.u32 %v2639_v43, %v2805_v15  ;;  %v641_v51 = vshrl.u32 %v2634_v22, %v2805_v15 }
 0x123   : > { %v648_v53 = vor.u32 %v647_v18, %v646_v48  ;;  %v568_v56 = vmul.u32 %v2812_v21, %v552_v46  ;;  %vm570_vm4 = vc.u32 %v2952_v44, %v2946_v20  ;;  %v635_v28 = vshrl.u32 %v2638_v39, %v2805_v15 }
 0x124   : > { %v784_v5 = vshll.u32 %v2965_v11, 30  ;;  %v572_v23 = vsel %vm570_vm4, %v571_v50, %v2947_v25  ;;  %v637_v58 = vshll.u32 %v2638_v39, %v2796_v7  ;;  %v640_v26 = vshll.u32 %v2639_v43, %v2796_v7 }
 0x125   : > { %vm652_vm5 = vcmp.lt.s32.totalorder %v2959_v33, 4  ;;  %v634_v21 = vshll.u32 %v2637_v37, %v2796_v7  ;;  %vm2298_vm6 = vcmp.lt.s32.totalorder %v2297_v19, 0  ;;  %v573_v61 = vadd.s32 %v572_v23, %v568_v56 }
 0x126   : > { %v2984_v59 = vsub.s32 %v781_v12, %v784_v5  ;;  %v639_v62 = vor.u32 %v638_v24, %v637_v58  ;;  %v642_v63 = vor.u32 %v641_v51, %v640_v26  ;;  %v662_v45 = vsel %vm652_vm5, %v648_v53, 1326507024 }
 0x127   : > { %v658_v10 = vsel %vm652_vm5, %v645_v34, 920167782  ;;  %v574_v16 = vadd.s32 536870912, %v573_v61  ;;  %v625_v2 = vor.u32 8388608, %v624_v31  ;;  %v636_v4 = vor.u32 %v635_v28, %v634_v21 }
 0x128   : > { %v787_v1 = vsub.s32 0, %v2984_v59  ;;  %v896_v6 = vsel %vm2298_vm6, 0, %v2297_v19  ;;  %vm649_vm7 = vcmp.lt.s32.totalorder %v2959_v33, 1  ;;  %vm651_vm8 = vcmp.lt.s32.totalorder %v2959_v33, 3 }
 0x129   : > { %v2996_v7 = vshrl.u32 %v574_v16, 30  ;;  %vm650_vm9 = vcmp.lt.s32.totalorder %v2959_v33, 2  ;;  %v661_v9 = vsel %vm649_vm7, %v639_v62, %v642_v63  ;;  %v663_v12 = vsel %vm651_vm8, %v645_v34, %v662_v45 }
 0x12a   : > { %v2292_v8 = vmin.u32 %v787_v1, %v2984_v59  ;;  %v664_v14 = vsel %vm650_vm9, %v661_v9, %v663_v12  ;;  %v657_v3 = vsel %vm649_vm7, %v636_v4, %v639_v62  ;;  %v659_v25 = vsel %vm651_vm8, %v642_v63, %v658_v10 }
 0x12b   : > { %v576_v18 = vshll.u32 %v2996_v7, 30  ;;  %v665_v35 = vshll.u32 %v625_v2, 8  ;;  %v901_v38 = vsub.s32 4294967266, %v896_v6  ;;  %v654_v31 = vsel %vm652_vm5, %v642_v63, 2102212464 }
 0x12c   : > { %v789_v13 = vclz %v2292_v8  ;;  %v633_v19 = vshrl.u32 %v2637_v37, %v2805_v15  ;;  %v660_v50 = vsel %vm650_vm9, %v657_v3, %v659_v25  ;;  %v655_v23 = vsel %vm651_vm8, %v639_v62, %v654_v31 }
 0x12d   : > { %v577_v46 = vsub.s32 %v573_v61, %v576_v18  ;;  %v3012_v34 = vmul.u32.u64.low %v665_v35, %v664_v14  ;;  %v3013_v48 = vmul.u32.u64.high %v665_v35, %v664_v14, %v3012_v34  ;;  %v902_v53 = vadd.s32 127, %v901_v38 }
 0x12e   : > { %v2293_v30 = vadd.s32 4294967294, %v789_v13  ;;  %v653_v56 = vsel %vm649_vm7, %v633_v19, %v636_v4  ;;  %v3023_v58 = vmul.u32.u64.low %v665_v35, %v660_v50  ;;  %v3024_v26 = vmul.u32.u64.high %v665_v35, %v660_v50, %v3023_v58 }
 0x12f   : > { %v579_v51 = vsub.s32 0, %v577_v46  ;;  %v897_v21 = vsub.s32 32, %v896_v6  ;;  %v656_v63 = vsel %vm650_vm9, %v653_v56, %v655_v23  ;;  %v881_v45 = vadd.s32 %v2862_v29, %v2859_v40 }
 0x130   : > { %vm2294_vm10 = vcmp.lt.s32.totalorder %v2293_v30, 0  ;;  %v903_v1 = vshll.u32 %v902_v53, 23  ;;  %vm674_vm11 = vc.u32 %v3013_v48, %v3023_v58  ;;  %v675_v16 = vadd.s32 1, %v3024_v26 }
 0x131   : > { %v792_v24 = vsel %vm2294_vm10, 0, %v2293_v30  ;;  %v2284_v28 = vmin.u32 %v579_v51, %v577_v46  ;;  %v899_v2 = vshrl.u32 %v881_v45, %v897_v21  ;;  %v777_v4 = vadd.s32 %v2909_v49, %v2907_v36 }
 0x132   : > { %v797_v5 = vsub.s32 4294967266, %v792_v24  ;;  %v793_v10 = vsub.s32 32, %v792_v24  ;;  %v672_v9 = vmul.u32 %v665_v35, %v656_v63  ;;  %v898_v33 = vshll.u32 %v2925_v60, %v896_v6  ;;  %v929_v60 = vld [vmem:[%s3752_s4] sm:$0xff] }
 0x133   : > { %v581_v61 = vclz %v2284_v28  ;;  %v676_v12 = vsel %vm674_vm11, %v675_v16, %v3024_v26  ;;  %v904_v40 = vor.u32 4788187, %v903_v1  ;;  %v569_v18 = vadd.s32 %v2946_v20, %v2952_v44 }
 0x134   : > { %v798_v15 = vadd.s32 127, %v797_v5  ;;  %v795_v29 = vshrl.u32 %v777_v4, %v793_v10  ;;  %v677_v14 = vadd.s32 %v676_v12, %v672_v9  ;;  %v900_v38 = vor.u32 %v899_v2, %v898_v33 }
 0x135   : > { %v2285_v62 = vadd.s32 4294967294, %v581_v61  ;;  %v794_v30 = vshll.u32 %v2984_v59, %v792_v24  ;;  %v905_v6 = vand.u32 2147483647, %v904_v40  ;;  %vm933_vm13 = vcmask 261120  }
 0x136   : > { %v799_v8 = vshll.u32 %v798_v15, 23  ;;  %v678_v49 = vadd.s32 536870912, %v677_v14  ;;  %v907_v20 = vcvt.s32.f32 %v900_v38  ;;  %2388 = vmatprep.mubr.msk.f32.mxu1 %vm933_vm13, %v929_v60  ;;  %vm827_vm14 = vcmp.lt.s32.totalorder %v2780_v52, 0 }
 0x137   : > { %vm2286_vm12 = vcmp.lt.s32.totalorder %v2285_v62, 0  ;;  %v796_v34 = vor.u32 %v795_v29, %v794_v30  ;;  %vm723_vm15 = vcmp.lt.s32.totalorder %v2782_v54, 0  ;;  %vm3056_vm1 = vcmp.le.f32.partialorder %v825_v57, 0.7853982 }
 0x138   : > { %v584_v13 = vsel %vm2286_vm12, 0, %v2285_v62  ;;  %v800_v36 = vor.u32 4788187, %v799_v8  ;;  %v3044_v50 = vshrl.u32 %v678_v49, 30  ;;  %v908_v5 = vmul.f32 %v907_v20, %v905_v6 }
 0x139   : > { %v585_v3 = vsub.s32 32, %v584_v13  ;;  %v589_v25 = vsub.s32 4294967266, %v584_v13  ;;  %v586_v19 = vshll.u32 %v577_v46, %v584_v13  ;;  %v803_v56 = vcvt.s32.f32 %v796_v34 }
 0x13a   : > { %v801_v44 = vand.u32 2147483647, %v800_v36  ;;  %v680_v59 = vshll.u32 %v3044_v50, 30  ;;  %v909_v46 = vxor.u32 2147483648, %v908_v5  ;;  %vm515_vm2 = vcmp.lt.s32.totalorder %v2776_v42, 0 }
 0x13b   : > { %v587_v35 = vshrl.u32 %v569_v18, %v585_v3  ;;  %v590_v31 = vadd.s32 127, %v589_v25  ;;  %vm3063_vm3 = vcmp.le.f32.partialorder %v721_v0, 0.7853982  ;;  %v673_v57 = vadd.s32 %v3023_v58, %v3013_v48 }
 0x13c   : > { %v681_v23 = vsub.s32 %v677_v14, %v680_v59  ;;  %v804_v26 = vmul.f32 %v803_v56, %v801_v44  ;;  %v910_v10 = vsel %vm827_vm14, %v909_v46, %v908_v5  ;;  %vm3076_vm4 = vcmp.le.f32.partialorder %v513_v55, 0.7853982 }
 0x13d   : > { %v591_v51 = vshll.u32 %v590_v31, 23  ;;  %v588_v53 = vor.u32 %v587_v35, %v586_v19  ;;  %v913_v33 = vsel %vm3056_vm1, %v2780_v52, %v910_v10  ;;  %v599_v25 = vsub.s32 4, %v2996_v7 }
 0x13e   : > { %v683_v15 = vsub.s32 0, %v681_v23  ;;  %v805_v45 = vxor.u32 2147483648, %v804_v26  ;;  %2543 = vcosq.f32 %v913_v33  ;;  %v807_v58 = vsub.s32 4, %v2965_v11 }
 0x13f   : > { %v592_v24 = vor.u32 4788187, %v591_v51  ;;  %v595_v21 = vcvt.s32.f32 %v588_v53  ;;  %2545 = vsinq.f32 %v913_v33  ;;  %v911_v30 = vsub.s32 4, %v2898_v47 }
 0x140   : > { %v2288_v63 = vmin.u32 %v683_v15, %v681_v23  ;;  %v806_v2 = vsel %vm723_vm15, %v805_v45, %v804_v26  ;;  %v600_v49 = vsel %vm515_vm2, %v599_v25, %v2996_v7  ;;  %v808_v60 = vsel %vm723_vm15, %v807_v58, %v2965_v11 }
 0x141   : > { %v593_v28 = vand.u32 2147483647, %v592_v24  ;;  %v809_v0 = vsel %vm3063_vm3, %v2782_v54, %v806_v2  ;;  %v912_v6 = vsel %vm827_vm14, %v911_v30, %v2898_v47  ;;  %v703_v34 = vsub.s32 4, %v3044_v50 }
 0x142   : > { %v685_v1 = vclz %v2288_v63  ;;  %2547 = vcosq.f32 %v809_v0  ;;  %v602_v19 = vsel %vm3076_vm4, 0, %v600_v49  ;;  %v810_v7 = vsel %vm3063_vm3, 0, %v808_v60  ;;  %v1038_v60 = vpop.permute.xlu0 %1037 }
 0x143   : > { %v596_v61 = vmul.f32 %v595_v21, %v593_v28  ;;  %2549 = vsinq.f32 %v809_v0  ;;  %v914_v20 = vsel %vm3056_vm1, 0, %v912_v6  ;;  %vm619_vm5 = vcmp.lt.s32.totalorder %v2774_v41, 0 }
 0x144   : > { %v2289_v16 = vadd.s32 4294967294, %v685_v1  ;;  %v606_v59 = vadd.s32 3, %v602_v19  ;;  %v704_v47 = vsel %vm619_vm5, %v703_v34, %v3044_v50  ;;  %vm618_vm6 = vcmp.le.f32.partialorder %v617_v17, 0.7853982 }
 0x145   : > { %v597_v62 = vxor.u32 2147483648, %v596_v61  ;;  %v814_v56 = vadd.s32 3, %v810_v7  ;;  %v706_v15 = vsel %vm618_vm6, 0, %v704_v47  ;;  %vm605_vm1 = vweird.f32 %v2776_v42 }
 0x146   : > { %vm2290_vm0 = vcmp.lt.s32.totalorder %v2289_v16, 0  ;;  %v710_v1 = vadd.s32 3, %v706_v15  ;;  %vm813_vm3 = vweird.f32 %v2782_v54  ;;  %v1043_v54 = vpop.permute.xlu1 %1042  ;;  %v1066_v34 = vpop.permute.xlu0 %1065 }
 0x147   : > { %v688_v8 = vsel %vm2290_vm0, 0, %v2289_v16  ;;  %v598_v12 = vsel %vm515_vm2, %v597_v62, %v596_v61  ;;  %v607_v61 = vand.u32 3, %v606_v59  ;;  %v815_v63 = vand.u32 3, %v814_v56 }
 0x148   : > { %v689_v40 = vsub.s32 32, %v688_v8  ;;  %v693_v29 = vsub.s32 4294967266, %v688_v8  ;;  %v690_v14 = vshll.u32 %v681_v23, %v688_v8  ;;  %v601_v48 = vsel %vm3076_vm4, %v2776_v42, %v598_v12  ;;  %v2544_v44 = vpop.eup %2543  ;;  %v930_v42 = vld [vmem:[%s3752_s4 + $0x8] sm:$0xff] }
 0x149   : > { %2551 = vcosq.f32 %v601_v48  ;;  %v2546_v53 = vpop.eup %2545  ;;  %v918_v23 = vadd.s32 3, %v914_v20  ;;  %v925_v10 = vxor.u32 2147483648, %v2544_v44  ;;  %vm609_vm7 = vcmp.eq.s32.totalorder %v607_v61, 0 }
 0x14a   : > { %v691_v18 = vshrl.u32 %v673_v57, %v689_v40  ;;  %v694_v3 = vadd.s32 127, %v693_v29  ;;  %2553 = vsinq.f32 %v601_v48  ;;  %v922_v50 = vxor.u32 2147483648, %v2546_v53  ;;  %v1071_v6 = vpop.permute.xlu1 %1070  ;;  %v1048_v7 = vpop.permute.xlu0 %1047 }
 0x14b   : > { %v919_v45 = vand.u32 3, %v918_v23  ;;  %vm612_vm8 = vcmp.eq.s32.totalorder %v607_v61, 2  ;;  %vm817_vm9 = vcmp.eq.s32.totalorder %v815_v63, 0  ;;  %v711_v4 = vand.u32 3, %v710_v1 }
 0x14c   : > { %v692_v55 = vor.u32 %v691_v18, %v690_v14  ;;  %v695_v38 = vshll.u32 %v694_v3, 23  ;;  %v2548_v24 = vpop.eup %2547  ;;  %vm820_vm12 = vcmp.eq.s32.totalorder %v815_v63, 2  ;;  %vm608_vm14 = vcmp.lt.s32.totalorder %v607_v61, 2 }
 0x14d   : > { %v2550_v28 = vpop.eup %2549  ;;  %v821_v2 = vxor.u32 2147483648, %v2548_v24  ;;  %vm921_vm10 = vcmp.eq.s32.totalorder %v919_v45, 0  ;;  %vm924_vm11 = vcmp.eq.s32.totalorder %v919_v45, 2  ;;  %vm816_vm15 = vcmp.lt.s32.totalorder %v815_v63, 2 }
 0x14e   : > { %v696_v36 = vor.u32 4788187, %v695_v38  ;;  %v699_v31 = vcvt.s32.f32 %v692_v55  ;;  %v818_v17 = vxor.u32 2147483648, %v2550_v28  ;;  %v923_v8 = vsel %vm921_vm10, %v2544_v44, %v922_v50  ;;  %v1053_v19 = vpop.permute.xlu1 %1052 }
 0x14f   : > { %v926_v9 = vsel %vm924_vm11, %v925_v10, %v2546_v53  ;;  %v822_v40 = vsel %vm820_vm12, %v821_v2, %v2550_v28  ;;  %vm920_vm0 = vcmp.lt.s32.totalorder %v919_v45, 2  ;;  %vm716_vm2 = vcmp.eq.s32.totalorder %v711_v4, 2 }
 0x150   : > { %v697_v35 = vand.u32 2147483647, %v696_v36  ;;  %v819_v57 = vsel %vm817_vm9, %v2548_v24, %v818_v17  ;;  %v927_v3 = vsel %vm920_vm0, %v923_v8, %v926_v9  ;;  %vm712_vm4 = vcmp.lt.s32.totalorder %v711_v4, 2  ;;  %v2319_v8 = vld [vmem:[%s3752_s4 + $0x20] sm:$0xff] }
 0x151   : > { %v823_v18 = vsel %vm816_vm15, %v819_v57, %v822_v40  ;;  %2402 = vmatprep.mubr.msk.f32.mxu0 %vm933_vm13, %v2319_v8 }
 0x152   : > { %v700_v51 = vmul.f32 %v699_v31, %v697_v35  ;;  %v824_v38 = vsel %vm813_vm3, nan, %v823_v18  ;;  %v1081_v28 = vpop.permute.xlu1 %1080 }
 0x153   : > { %v2552_v21 = vpop.eup %2551 }
 0x154   : > { %v701_v11 = vxor.u32 2147483648, %v700_v51  ;;  %v2554_v46 = vpop.eup %2553  ;;  %v613_v16 = vxor.u32 2147483648, %v2552_v21 }
 0x155   : > { %v610_v62 = vxor.u32 2147483648, %v2554_v46 }
 0x156   : > { %v702_v5 = vsel %vm619_vm5, %v701_v11, %v700_v51  ;;  %v614_v12 = vsel %vm612_vm8, %v613_v16, %v2554_v46  ;;  %vm713_vm5 = vcmp.eq.s32.totalorder %v711_v4, 0  ;;  %v1076_v46 = vpop.permute.xlu0 %1075 }
 0x157   : > { %v705_v26 = vsel %vm618_vm6, %v2774_v41, %v702_v5  ;;  %v611_v33 = vsel %vm609_vm7, %v2552_v21, %v610_v62  ;;  %vm917_vm6 = vweird.f32 %v2780_v52  ;;  %vm709_vm7 = vweird.f32 %v2774_v41  ;;  %v931_v52 = vld [vmem:[%s3752_s4 + $0x10] sm:$0xff]  ;;  %v932_v41 = vld [vmem:[%s3752_s4 + $0x18] sm:$0xff] }
 0x158   : > { %2555 = vcosq.f32 %v705_v26  ;;  %v615_v0 = vsel %vm608_vm14, %v611_v33, %v614_v12  ;;  %v928_v30 = vsel %vm917_vm6, nan, %v927_v3 }
 0x159   : > { %2557 = vsinq.f32 %v705_v26  ;;  %v616_v58 = vsel %vm605_vm1, nan, %v615_v0  ;;  %v2423_v31 = vpack.c.bf16 %v928_v30, %v824_v38 }
 0x162   : > { %v2556_v29 = vpop.eup %2555 }
 0x163   : > { %v2558_v13 = vpop.eup %2557  ;;  %v717_v14 = vxor.u32 2147483648, %v2556_v29 }
 0x164   : > { %v714_v25 = vxor.u32 2147483648, %v2558_v13 }
 0x165   : > { %v718_v48 = vsel %vm716_vm2, %v717_v14, %v2558_v13 }
 0x166   : > { %v715_v55 = vsel %vm713_vm5, %v2556_v29, %v714_v25 }
 0x167   : > { %v719_v36 = vsel %vm712_vm4, %v715_v55, %v718_v48 }
 0x168   : > { %v720_v49 = vsel %vm709_vm7, nan, %v719_v36 }
 0x169   : > { %v2419_v35 = vpack.c.bf16 %v720_v49, %v616_v58 }
 0x16b   : > { %2420 = vmatprep.subr.bf16.mxu1 %v2419_v35 }
 0x16c   : > { %2422 = vmatpush3.bf16.msra.mxu1 %v2419_v35 }
 0x16d   : > { %2424 = vmatprep.subr.bf16.mxu1 %v2423_v31 }
 0x170   : > { %2426 = vmatpush3.bf16.msra.mxu1 %v2423_v31 }
 0x173   : > { %2389 = vmatmul.mubr.msk.f32.vlgmr.msra.gmra.mrb[0].mxu1 %vm933_vm13, %v930_v42 }
 0x174   : > { %2391 = vmatprep.mubr.msk.f32.mxu1 %vm933_vm13, %v931_v52 }
 0x177   : > { %2392 = vmatmul.mubr.msk.f32.gmra.mrb[2].mxu1 %vm933_vm13, %v932_v41 }
 0x246   : > { %v2390_v51 = vpop.f32.mrb[0].mxu1 }
 0x247   : > { %v1056_v20 = vmul.f32 %v2390_v51, %v1043_v54  ;;  %v1012_v44 = vpop.f32.mrb[1].mxu1 }
 0x248   : > { %v1055_v11 = vmul.f32 %v1038_v60, %v1012_v44 }
 0x249   : > { %v3126_v53 = vadd.f32 %v1071_v6, %v1056_v20 }
 0x24a   : > { %v3128_v59 = vadd.f32 %v1066_v34, %v1055_v11  ;;  %v2393_v47 = vpop.f32.mrb[2].mxu1 }
 0x24b   : > { %v1191_v24 = vand.u32 2147483647, %v3126_v53  ;;  %v1194_v5 = vand.u32 2139095040, %v3126_v53  ;;  %v1058_v56 = vmul.f32 %v2393_v47, %v1053_v19  ;;  %v1022_v23 = vpop.f32.mrb[3].mxu1 }
 0x24c   : > { %v1087_v26 = vand.u32 2147483647, %v3128_v59  ;;  %v1090_v21 = vand.u32 2139095040, %v3128_v59  ;;  %v1057_v15 = vmul.f32 %v1048_v7, %v1022_v23 }
 0x24d   : > { %v1195_v61 = vshrl.u32 %v1194_v5, 23  ;;  %v1198_v63 = vand.u32 8388607, %v1191_v24  ;;  %v3136_v45 = vadd.f32 %v1081_v28, %v1058_v56 }
 0x24e   : > { %v1091_v1 = vshrl.u32 %v1090_v21, 23  ;;  %v1094_v50 = vand.u32 8388607, %v1087_v26  ;;  %v3140_v10 = vadd.f32 %v1076_v46, %v1057_v15 }
 0x24f   : > { %v2307_v62 = vadd.s32 4294967169, %v1195_v61  ;;  %v1399_v16 = vand.u32 2147483647, %v3136_v45  ;;  %v1199_v17 = vor.u32 8388608, %v1198_v63  ;;  %v1402_v4 = vand.u32 2139095040, %v3136_v45 }
 0x250   : > { %v2303_v2 = vadd.s32 4294967169, %v1091_v1  ;;  %v1095_v33 = vor.u32 8388608, %v1094_v50  ;;  %v1298_v29 = vand.u32 2139095040, %v3140_v10  ;;  %v1295_v13 = vand.u32 2147483647, %v3140_v10 }
 0x251   : > { %v1201_v9 = vadd.s32 1, %v2307_v62  ;;  %v1403_v57 = vshrl.u32 %v1402_v4, 23  ;;  %v3150_v40 = vand.u32 8388607, %v1399_v16  ;;  %v3154_v14 = vshll.u32 %v1199_v17, 8 }
 0x252   : > { %v1097_v12 = vadd.s32 1, %v2303_v2  ;;  %v3156_v58 = vshll.u32 %v1095_v33, 8  ;;  %v3161_v36 = vshrl.u32 %v1298_v29, 23 }
 0x253   : > { %vm1202_vm8 = vcmp.gt.s32.totalorder %v1201_v9, 0  ;;  %v2315_v18 = vadd.s32 4294967169, %v1403_v57  ;;  %v1407_v30 = vor.u32 8388608, %v3150_v40 }
 0x254   : > { %v1203_v0 = vsel %vm1202_vm8, %v1201_v9, 0  ;;  %vm1098_vm9 = vcmp.gt.s32.totalorder %v1097_v12, 0 }
 0x255   : > { %v1204_v3 = vshrl.u32 %v1203_v0, 5  ;;  %v1205_v25 = vand.u32 31, %v1203_v0  ;;  %v1099_v48 = vsel %vm1098_vm9, %v1097_v12, 0  ;;  %v3165_v42 = vadd.s32 1, %v2315_v18 }
 0x256   : > { %v3158_v55 = vshrl.u32 %v1099_v48, 5  ;;  %v1101_v38 = vand.u32 31, %v1099_v48 }
 0x257   : > { %v1206_v49 = vsub.s32 32, %v1205_v25  ;;  %v1208_v35 = vshll.u32 %v2637_v37, %v1205_v25  ;;  %v1211_v31 = vshll.u32 %v2638_v39, %v1205_v25  ;;  %v1214_v52 = vshll.u32 %v2639_v43, %v1205_v25 }
 0x258   : > { %v1217_v41 = vshll.u32 %v2634_v22, %v1205_v25  ;;  %v1220_v54 = vshll.u32 %v2635_v27, %v1205_v25  ;;  %vm1223_vm10 = vcmp.lt.s32.totalorder %v1204_v3, 1  ;;  %vm1224_vm11 = vcmp.lt.s32.totalorder %v1204_v3, 2 }
 0x259   : > { %v1209_v60 = vshrl.u32 %v2638_v39, %v1206_v49  ;;  %v1212_v6 = vshrl.u32 %v2639_v43, %v1206_v49  ;;  %v1215_v34 = vshrl.u32 %v2634_v22, %v1206_v49  ;;  %v1207_v19 = vshrl.u32 %v2637_v37, %v1206_v49 }
 0x25a   : > { %v1218_v51 = vshrl.u32 %v2635_v27, %v1206_v49  ;;  %v1221_v7 = vshrl.u32 %v2636_v32, %v1206_v49  ;;  %vm1225_vm12 = vcmp.lt.s32.totalorder %v1204_v3, 3  ;;  %v1102_v47 = vsub.s32 32, %v1101_v38 }
 0x25b   : > { %v1210_v20 = vor.u32 %v1209_v60, %v1208_v35  ;;  %v1213_v44 = vor.u32 %v1212_v6, %v1211_v31  ;;  %v1216_v11 = vor.u32 %v1215_v34, %v1214_v52  ;;  %vm1226_vm14 = vcmp.lt.s32.totalorder %v1204_v3, 4 }
 0x25c   : > { %v1219_v5 = vor.u32 %v1218_v51, %v1217_v41  ;;  %v1222_v56 = vor.u32 %v1221_v7, %v1220_v54  ;;  %v1104_v23 = vshll.u32 %v2637_v37, %v1101_v38  ;;  %v1107_v50 = vshll.u32 %v2638_v39, %v1101_v38 }
 0x25d   : > { %v1227_v28 = vsel %vm1223_vm10, %v1207_v19, %v1210_v20  ;;  %v1228_v21 = vsel %vm1226_vm14, %v1216_v11, 2102212464  ;;  %v1231_v15 = vsel %vm1223_vm10, %v1210_v20, %v1213_v44  ;;  %v1235_v46 = vsel %vm1223_vm10, %v1213_v44, %v1216_v11 }
 0x25e   : > { %v1229_v61 = vsel %vm1225_vm12, %v1213_v44, %v1228_v21  ;;  %v1232_v63 = vsel %vm1226_vm14, %v1219_v5, 920167782  ;;  %v1236_v1 = vsel %vm1226_vm14, %v1222_v56, 1326507024  ;;  %v1103_v2 = vshrl.u32 %v2637_v37, %v1102_v47 }
 0x25f   : > { %v1233_v62 = vsel %vm1225_vm12, %v1216_v11, %v1232_v63  ;;  %v1237_v17 = vsel %vm1225_vm12, %v1219_v5, %v1236_v1  ;;  %v1105_v4 = vshrl.u32 %v2638_v39, %v1102_v47  ;;  %v1230_v8 = vsel %vm1224_vm11, %v1227_v28, %v1229_v61 }
 0x260   : > { %v1234_v9 = vsel %vm1224_vm11, %v1231_v15, %v1233_v62  ;;  %v1238_v33 = vsel %vm1224_vm11, %v1235_v46, %v1237_v17  ;;  %v1108_v12 = vshrl.u32 %v2639_v43, %v1102_v47  ;;  %v1110_v49 = vshll.u32 %v2639_v43, %v1101_v38 }
 0x261   : > { %v3191_v57 = vmul.u32.u64.low %v3154_v14, %v1238_v33  ;;  %v3192_v29 = vmul.u32.u64.high %v3154_v14, %v1238_v33, %v3191_v57  ;;  %v3195_v0 = vmul.u32.u64.low %v3154_v14, %v1234_v9  ;;  %v3196_v18 = vmul.u32.u64.high %v3154_v14, %v1234_v9, %v3195_v0 }
 0x262   : > { %v1106_v25 = vor.u32 %v1105_v4, %v1104_v23  ;;  %v1109_v48 = vor.u32 %v1108_v12, %v1107_v50  ;;  %v1111_v35 = vshrl.u32 %v2634_v22, %v1102_v47  ;;  %v1246_v3 = vmul.u32 %v3154_v14, %v1230_v8 }
 0x263   : > { %v1113_v31 = vshll.u32 %v2634_v22, %v1101_v38  ;;  %v1114_v52 = vshrl.u32 %v2635_v27, %v1102_v47  ;;  %v1117_v41 = vshrl.u32 %v2636_v32, %v1102_v47  ;;  %v1116_v60 = vshll.u32 %v2635_v27, %v1101_v38 }
 0x264   : > { %v1112_v54 = vor.u32 %v1111_v35, %v1110_v49  ;;  %vm1119_vm15 = vcmp.lt.s32.totalorder %v3158_v55, 1  ;;  %vm1120_vm0 = vcmp.lt.s32.totalorder %v3158_v55, 2  ;;  %vm1248_vm1 = vc.u32 %v3192_v29, %v3195_v0 }
 0x265   : > { %v1249_v6 = vadd.s32 1, %v3196_v18  ;;  %v1115_v34 = vor.u32 %v1114_v52, %v1113_v31  ;;  %vm1121_vm2 = vcmp.lt.s32.totalorder %v3158_v55, 3  ;;  %v1118_v14 = vor.u32 %v1117_v41, %v1116_v60 }
 0x266   : > { %vm1122_vm3 = vcmp.lt.s32.totalorder %v3158_v55, 4  ;;  %v1123_v19 = vsel %vm1119_vm15, %v1103_v2, %v1106_v25  ;;  %v1127_v51 = vsel %vm1119_vm15, %v1106_v25, %v1109_v48  ;;  %v1131_v44 = vsel %vm1119_vm15, %v1109_v48, %v1112_v54 }
 0x267   : > { %v1250_v7 = vsel %vm1248_vm1, %v1249_v6, %v3196_v18  ;;  %v1124_v38 = vsel %vm1122_vm3, %v1112_v54, 2102212464  ;;  %v1128_v20 = vsel %vm1122_vm3, %v1115_v34, 920167782  ;;  %v1132_v56 = vsel %vm1122_vm3, %v1118_v14, 1326507024 }
 0x268   : > { %v1251_v11 = vadd.s32 %v1250_v7, %v1246_v3  ;;  %v1125_v47 = vsel %vm1121_vm2, %v1109_v48, %v1124_v38  ;;  %v1129_v5 = vsel %vm1121_vm2, %v1112_v54, %v1128_v20  ;;  %v1133_v21 = vsel %vm1121_vm2, %v1115_v34, %v1132_v56 }
 0x269   : > { %v1126_v23 = vsel %vm1120_vm0, %v1123_v19, %v1125_v47  ;;  %v1130_v28 = vsel %vm1120_vm0, %v1127_v51, %v1129_v5  ;;  %vm1410_vm4 = vcmp.gt.s32.totalorder %v3165_v42, 0  ;;  %v1134_v46 = vsel %vm1120_vm0, %v1131_v44, %v1133_v21 }
 0x26a   : > { %v1252_v15 = vadd.s32 536870912, %v1251_v11  ;;  %v3222_v61 = vmul.u32.u64.low %v3156_v58, %v1130_v28  ;;  %v3223_v63 = vmul.u32.u64.high %v3156_v58, %v1130_v28, %v3222_v61  ;;  %v1411_v62 = vsel %vm1410_vm4, %v3165_v42, 0 }
 0x26b   : > { %v3227_v1 = vmul.u32.u64.low %v3156_v58, %v1134_v46  ;;  %v3228_v50 = vmul.u32.u64.high %v3156_v58, %v1134_v46, %v3227_v1  ;;  %v2311_v17 = vadd.s32 4294967169, %v3161_v36  ;;  %v1413_v4 = vand.u32 31, %v1411_v62 }
 0x26c   : > { %v3232_v2 = vshrl.u32 %v1252_v15, 30  ;;  %v1142_v8 = vmul.u32 %v3156_v58, %v1126_v23  ;;  %v3237_v55 = vshll.u32 %v1407_v30, 8  ;;  %v3241_v9 = vand.u32 8388607, %v1295_v13 }
 0x26d   : > { %v1145_v12 = vadd.s32 1, %v3223_v63  ;;  %v1412_v42 = vshrl.u32 %v1411_v62, 5  ;;  %v1414_v57 = vsub.s32 32, %v1413_v4  ;;  %vm1144_vm5 = vc.u32 %v3228_v50, %v3222_v61 }
 0x26e   : > { %v1254_v33 = vshll.u32 %v3232_v2, 30  ;;  %v1416_v36 = vshll.u32 %v2637_v37, %v1413_v4  ;;  %v1419_v58 = vshll.u32 %v2638_v39, %v1413_v4  ;;  %v1305_v40 = vadd.s32 1, %v2311_v17 }
 0x26f   : > { %v1146_v18 = vsel %vm1144_vm5, %v1145_v12, %v3223_v63  ;;  %v1417_v25 = vshrl.u32 %v2638_v39, %v1414_v57  ;;  %v1422_v48 = vshll.u32 %v2639_v43, %v1413_v4  ;;  %v1420_v35 = vshrl.u32 %v2639_v43, %v1414_v57 }
 0x270   : > { %v3249_v30 = vsub.s32 %v1251_v11, %v1254_v33  ;;  %v1147_v49 = vadd.s32 %v1146_v18, %v1142_v8  ;;  %v1423_v3 = vshrl.u32 %v2634_v22, %v1414_v57  ;;  %v1425_v31 = vshll.u32 %v2634_v22, %v1413_v4 }
 0x271   : > { %v1418_v41 = vor.u32 %v1417_v25, %v1416_v36  ;;  %v1426_v54 = vshrl.u32 %v2635_v27, %v1414_v57  ;;  %v1428_v60 = vshll.u32 %v2635_v27, %v1413_v4  ;;  %v1421_v34 = vor.u32 %v1420_v35, %v1419_v58 }
 0x272   : > { %v1257_v52 = vsub.s32 0, %v3249_v30  ;;  %v1148_v6 = vadd.s32 536870912, %v1147_v49  ;;  %v1424_v14 = vor.u32 %v1423_v3, %v1422_v48  ;;  %v1429_v19 = vshrl.u32 %v2636_v32, %v1414_v57 }
 0x273   : > { %v1415_v7 = vshrl.u32 %v2637_v37, %v1414_v57  ;;  %v1427_v38 = vor.u32 %v1426_v54, %v1425_v31  ;;  %vm1431_vm6 = vcmp.lt.s32.totalorder %v1412_v42, 1  ;;  %vm1433_vm7 = vcmp.lt.s32.totalorder %v1412_v42, 3 }
 0x274   : > { %v2308_v51 = vmin.u32 %v1257_v52, %v3249_v30  ;;  %v3263_v20 = vshrl.u32 %v1148_v6, 30  ;;  %v1430_v44 = vor.u32 %v1429_v19, %v1428_v60  ;;  %vm1434_vm8 = vcmp.lt.s32.totalorder %v1412_v42, 4 }
 0x275   : > { %v1435_v47 = vsel %vm1431_vm6, %v1415_v7, %v1418_v41  ;;  %v1436_v5 = vsel %vm1434_vm8, %v1424_v14, 2102212464  ;;  %v1439_v56 = vsel %vm1431_vm6, %v1418_v41, %v1421_v34  ;;  %v1440_v21 = vsel %vm1434_vm8, %v1427_v38, 920167782 }
 0x276   : > { %v1259_v11 = vclz %v2308_v51  ;;  %v1150_v23 = vshll.u32 %v3263_v20, 30  ;;  %v1437_v28 = vsel %vm1433_vm7, %v1421_v34, %v1436_v5  ;;  %v1443_v15 = vsel %vm1431_vm6, %v1421_v34, %v1424_v14 }
 0x277   : > { %vm1432_vm9 = vcmp.lt.s32.totalorder %v1412_v42, 2  ;;  %v1441_v63 = vsel %vm1433_vm7, %v1424_v14, %v1440_v21  ;;  %v1444_v1 = vsel %vm1434_vm8, %v1430_v44, 1326507024  ;;  %v1247_v48 = vadd.s32 %v3195_v0, %v3192_v29 }
 0x278   : > { %v2309_v46 = vadd.s32 4294967294, %v1259_v11  ;;  %v3268_v62 = vsub.s32 %v1147_v49, %v1150_v23  ;;  %v1438_v17 = vsel %vm1432_vm9, %v1435_v47, %v1437_v28  ;;  %v1442_v4 = vsel %vm1432_vm9, %v1439_v56, %v1441_v63 }
 0x279   : > { %v1445_v8 = vsel %vm1433_vm7, %v1427_v38, %v1444_v1  ;;  %v3272_v12 = vmul.u32.u64.low %v3237_v55, %v1442_v4  ;;  %v3273_v57 = vmul.u32.u64.high %v3237_v55, %v1442_v4, %v3272_v12  ;;  %vm1306_vm11 = vcmp.gt.s32.totalorder %v1305_v40, 0 }
 0x27a   : > { %vm2310_vm10 = vcmp.lt.s32.totalorder %v2309_v46, 0  ;;  %v1446_v33 = vsel %vm1432_vm9, %v1443_v15, %v1445_v8  ;;  %v1153_v58 = vsub.s32 0, %v3268_v62  ;;  %v1454_v3 = vmul.u32 %v3237_v55, %v1438_v17 }
 0x27b   : > { %v1262_v36 = vsel %vm2310_vm10, 0, %v2309_v46  ;;  %v3278_v18 = vmul.u32.u64.low %v3237_v55, %v1446_v33  ;;  %v3279_v25 = vmul.u32.u64.high %v3237_v55, %v1446_v33, %v3278_v18  ;;  %v1303_v31 = vor.u32 8388608, %v3241_v9 }
 0x27c   : > { %v1263_v49 = vsub.s32 32, %v1262_v36  ;;  %v1267_v42 = vsub.s32 4294967266, %v1262_v36  ;;  %v2304_v35 = vmin.u32 %v1153_v58, %v3268_v62  ;;  %v1307_v52 = vsel %vm1306_vm11, %v1305_v40, 0 }
 0x27d   : > { %v1264_v41 = vshll.u32 %v3249_v30, %v1262_v36  ;;  %v1457_v6 = vadd.s32 1, %v3273_v57  ;;  %vm1456_vm12 = vc.u32 %v3279_v25, %v3272_v12  ;;  %v3290_v29 = vshrl.u32 %v1307_v52, 5 }
 0x27e   : > { %v1265_v54 = vshrl.u32 %v1247_v48, %v1263_v49  ;;  %v1268_v60 = vadd.s32 127, %v1267_v42  ;;  %v1155_v34 = vclz %v2304_v35  ;;  %v1309_v0 = vand.u32 31, %v1307_v52 }
 0x27f   : > { %v1458_v55 = vsel %vm1456_vm12, %v1457_v6, %v3273_v57  ;;  %v1143_v9 = vadd.s32 %v3222_v61, %v3228_v50  ;;  %v3296_v44 = vshll.u32 %v1303_v31, 8  ;;  %v1173_v11 = vsub.s32 4, %v3263_v20 }
 0x280   : > { %v1266_v14 = vor.u32 %v1265_v54, %v1264_v41  ;;  %v1269_v19 = vshll.u32 %v1268_v60, 23  ;;  %v2305_v40 = vadd.s32 4294967294, %v1155_v34  ;;  %v1459_v30 = vadd.s32 %v1458_v55, %v1454_v3 }
 0x281   : > { %v1310_v51 = vsub.s32 32, %v1309_v0  ;;  %v1312_v38 = vshll.u32 %v2637_v37, %v1309_v0  ;;  %vm1327_vm15 = vcmp.lt.s32.totalorder %v3290_v29, 1  ;;  %v1315_v61 = vshll.u32 %v2638_v39, %v1309_v0 }
 0x282   : > { %v1270_v7 = vor.u32 4788187, %v1269_v19  ;;  %v1273_v47 = vcvt.s32.f32 %v1266_v14  ;;  %vm2306_vm14 = vcmp.lt.s32.totalorder %v2305_v40, 0  ;;  %v1460_v5 = vadd.s32 536870912, %v1459_v30 }
 0x283   : > { %v1313_v56 = vshrl.u32 %v2638_v39, %v1310_v51  ;;  %v1158_v28 = vsel %vm2306_vm14, 0, %v2305_v40  ;;  %v1316_v50 = vshrl.u32 %v2639_v43, %v1310_v51  ;;  %vm1193_vm0 = vcmp.lt.s32.totalorder %v3126_v53, 0 }
 0x284   : > { %v1271_v23 = vand.u32 2147483647, %v1270_v7  ;;  %v1159_v21 = vsub.s32 32, %v1158_v28  ;;  %v1163_v15 = vsub.s32 4294967266, %v1158_v28  ;;  %v3304_v46 = vshrl.u32 %v1460_v5, 30 }
 0x285   : > { %v1319_v63 = vshrl.u32 %v2634_v22, %v1310_v51  ;;  %v1160_v17 = vshll.u32 %v3268_v62, %v1158_v28  ;;  %v1314_v4 = vor.u32 %v1313_v56, %v1312_v38  ;;  %v1318_v8 = vshll.u32 %v2639_v43, %v1309_v0 }
 0x286   : > { %v1274_v1 = vmul.f32 %v1273_v47, %v1271_v23  ;;  %v1161_v33 = vshrl.u32 %v1143_v9, %v1159_v21  ;;  %v1164_v57 = vadd.s32 127, %v1163_v15  ;;  %v1462_v36 = vshll.u32 %v3304_v46, 30 }
 0x287   : > { %v1317_v58 = vor.u32 %v1316_v50, %v1315_v61  ;;  %v1321_v18 = vshll.u32 %v2634_v22, %v1309_v0  ;;  %v1322_v48 = vshrl.u32 %v2635_v27, %v1310_v51  ;;  %v1324_v49 = vshll.u32 %v2635_v27, %v1309_v0 }
 0x288   : > { %v1325_v42 = vshrl.u32 %v2636_v32, %v1310_v51  ;;  %v1162_v35 = vor.u32 %v1161_v33, %v1160_v17  ;;  %v1165_v3 = vshll.u32 %v1164_v57, 23  ;;  %v3314_v31 = vsub.s32 %v1459_v30, %v1462_v36 }
 0x289   : > { %v1320_v62 = vor.u32 %v1319_v63, %v1318_v8  ;;  %vm3318_vm1 = vcmp.le.f32.partialorder %v1191_v24, 0.7853982  ;;  %v1275_v41 = vxor.u32 2147483648, %v1274_v1  ;;  %v1311_v54 = vshrl.u32 %v2637_v37, %v1310_v51 }
 0x28a   : > { %v1323_v60 = vor.u32 %v1322_v48, %v1321_v18  ;;  %v1326_v6 = vor.u32 %v1325_v42, %v1324_v49  ;;  %v1166_v34 = vor.u32 4788187, %v1165_v3  ;;  %v1465_v0 = vsub.s32 0, %v3314_v31 }
 0x28b   : > { %vm1328_vm2 = vcmp.lt.s32.totalorder %v3290_v29, 2  ;;  %vm1330_vm3 = vcmp.lt.s32.totalorder %v3290_v29, 4  ;;  %v1169_v14 = vcvt.s32.f32 %v1162_v35  ;;  %vm1329_vm4 = vcmp.lt.s32.totalorder %v3290_v29, 3 }
 0x28c   : > { %v1335_v24 = vsel %vm1327_vm15, %v1314_v4, %v1317_v58  ;;  %v1336_v19 = vsel %vm1330_vm3, %v1323_v60, 920167782  ;;  %v1167_v55 = vand.u32 2147483647, %v1166_v34  ;;  %v2316_v9 = vmin.u32 %v1465_v0, %v3314_v31 }
 0x28d   : > { %v1332_v40 = vsel %vm1330_vm3, %v1320_v62, 2102212464  ;;  %v1337_v30 = vsel %vm1329_vm4, %v1320_v62, %v1336_v19  ;;  %v1276_v51 = vsel %vm1193_vm0, %v1275_v41, %v1274_v1  ;;  %v1339_v38 = vsel %vm1327_vm15, %v1317_v58, %v1320_v62 }
 0x28e   : > { %v1338_v7 = vsel %vm1328_vm2, %v1335_v24, %v1337_v30  ;;  %v1340_v47 = vsel %vm1330_vm3, %v1326_v6, 1326507024  ;;  %v1170_v5 = vmul.f32 %v1169_v14, %v1167_v55  ;;  %v1467_v56 = vclz %v2316_v9 }
 0x28f   : > { %v1331_v23 = vsel %vm1327_vm15, %v1311_v54, %v1314_v4  ;;  %v1341_v28 = vsel %vm1329_vm4, %v1323_v60, %v1340_v47  ;;  %v1333_v61 = vsel %vm1329_vm4, %v1317_v58, %v1332_v40  ;;  %vm1089_vm5 = vcmp.lt.s32.totalorder %v3128_v59, 0 }
 0x290   : > { %v1342_v50 = vsel %vm1328_vm2, %v1339_v38, %v1341_v28  ;;  %v3341_v21 = vmul.u32.u64.low %v3296_v44, %v1338_v7  ;;  %v3342_v15 = vmul.u32.u64.high %v3296_v44, %v1338_v7, %v3341_v21  ;;  %v1171_v63 = vxor.u32 2147483648, %v1170_v5 }
 0x291   : > { %v2317_v1 = vadd.s32 4294967294, %v1467_v56  ;;  %v3346_v17 = vmul.u32.u64.low %v3296_v44, %v1342_v50  ;;  %v3347_v8 = vmul.u32.u64.high %v3296_v44, %v1342_v50, %v3346_v17  ;;  %vm3352_vm6 = vcmp.le.f32.partialorder %v1087_v26, 0.7853982 }
 0x292   : > { %v1277_v33 = vsub.s32 4, %v3232_v2  ;;  %v1279_v57 = vsel %vm3318_vm1, %v3126_v53, %v1276_v51  ;;  %v1172_v36 = vsel %vm1089_vm5, %v1171_v63, %v1170_v5  ;;  %v1334_v58 = vsel %vm1328_vm2, %v1331_v23, %v1333_v61 }
 0x293   : > { %vm2318_vm7 = vcmp.lt.s32.totalorder %v2317_v1, 0  ;;  %2559 = vcosq.f32 %v1279_v57  ;;  %v1353_v48 = vadd.s32 1, %v3342_v15  ;;  %v1174_v26 = vsel %vm1089_vm5, %v1173_v11, %v3263_v20 }
 0x294   : > { %v1470_v18 = vsel %vm2318_vm7, 0, %v2317_v1  ;;  %v1175_v49 = vsel %vm3352_vm6, %v3128_v59, %v1172_v36  ;;  %v1278_v3 = vsel %vm1193_vm0, %v1277_v33, %v3232_v2  ;;  %v1455_v29 = vadd.s32 %v3272_v12, %v3279_v25 }
 0x295   : > { %v1471_v42 = vsub.s32 32, %v1470_v18  ;;  %v1475_v35 = vsub.s32 4294967266, %v1470_v18  ;;  %v1350_v62 = vmul.u32 %v3296_v44, %v1334_v58  ;;  %vm1352_vm8 = vc.u32 %v3347_v8, %v3341_v21 }
 0x296   : > { %2561 = vcosq.f32 %v1175_v49  ;;  %v1354_v11 = vsel %vm1352_vm8, %v1353_v48, %v3342_v15  ;;  %v1176_v41 = vsel %vm3352_vm6, 0, %v1174_v26  ;;  %v1280_v2 = vsel %vm3318_vm1, 0, %v1278_v3 }
 0x297   : > { %v1476_v20 = vadd.s32 127, %v1475_v35  ;;  %2563 = vsinq.f32 %v1175_v49  ;;  %v1355_v54 = vadd.s32 %v1354_v11, %v1350_v62  ;;  %v1473_v60 = vshrl.u32 %v1455_v29, %v1471_v42 }
 0x298   : > { %2565 = vsinq.f32 %v1279_v57  ;;  %v1180_v25 = vadd.s32 3, %v1176_v41  ;;  %v1472_v44 = vshll.u32 %v3314_v31, %v1470_v18  ;;  %v1284_v0 = vadd.s32 3, %v1280_v2 }
 0x299   : > { %v1477_v6 = vshll.u32 %v1476_v20, 23  ;;  %v1356_v12 = vadd.s32 536870912, %v1355_v54  ;;  %vm1179_vm14 = vweird.f32 %v3128_v59  ;;  %vm1283_vm1 = vweird.f32 %v3126_v53 }
 0x29a   : > { %v1474_v19 = vor.u32 %v1473_v60, %v1472_v44  ;;  %v1181_v9 = vand.u32 3, %v1180_v25  ;;  %v1285_v30 = vand.u32 3, %v1284_v0  ;;  %vm1401_vm3 = vcmp.lt.s32.totalorder %v3136_v45, 0 }
 0x29b   : > { %v1478_v34 = vor.u32 4788187, %v1477_v6  ;;  %v3383_v14 = vshrl.u32 %v1356_v12, 30  ;;  %v1351_v42 = vadd.s32 %v3341_v21, %v3347_v8  ;;  %vm3395_vm4 = vcmp.le.f32.partialorder %v1399_v16, 0.7853982 }
 0x29c   : > { %v1481_v47 = vcvt.s32.f32 %v1474_v19  ;;  %vm1182_vm9 = vcmp.lt.s32.totalorder %v1181_v9, 2  ;;  %vm1186_vm10 = vcmp.eq.s32.totalorder %v1181_v9, 2  ;;  %vm1183_vm11 = vcmp.eq.s32.totalorder %v1181_v9, 0 }
 0x29d   : > { %v2560_v24 = vpop.eup %2559  ;;  %v1358_v55 = vshll.u32 %v3383_v14, 30  ;;  %v1479_v40 = vand.u32 2147483647, %v1478_v34  ;;  %vm1290_vm12 = vcmp.eq.s32.totalorder %v1285_v30, 2  ;;  %vm1287_vm15 = vcmp.eq.s32.totalorder %v1285_v30, 0 }
 0x29e   : > { %v1291_v7 = vxor.u32 2147483648, %v2560_v24  ;;  %vm1286_vm0 = vcmp.lt.s32.totalorder %v1285_v30, 2  ;;  %v1485_v21 = vsub.s32 4, %v3304_v46  ;;  %v1381_v12 = vsub.s32 4, %v3383_v14 }
 0x29f   : > { %v1359_v51 = vsub.s32 %v1355_v54, %v1358_v55  ;;  %v1482_v28 = vmul.f32 %v1481_v47, %v1479_v40  ;;  %vm1297_vm5 = vcmp.lt.s32.totalorder %v3140_v10, 0  ;;  %vm1296_vm6 = vcmp.le.f32.partialorder %v1295_v13, 0.7853982 }
 0x2a0   : > { %v2562_v52 = vpop.eup %2561  ;;  %v1486_v16 = vsel %vm1401_vm3, %v1485_v21, %v3304_v46  ;;  %v1382_v0 = vsel %vm1297_vm5, %v1381_v12, %v3383_v14 }
 0x2a1   : > { %v2564_v38 = vpop.eup %2563  ;;  %v1187_v5 = vxor.u32 2147483648, %v2562_v52  ;;  %v1361_v56 = vsub.s32 0, %v1359_v51  ;;  %v1483_v58 = vxor.u32 2147483648, %v1482_v28  ;;  %v1488_v44 = vsel %vm3395_vm4, 0, %v1486_v16 }
 0x2a2   : > { %v1184_v31 = vxor.u32 2147483648, %v2564_v38  ;;  %v2566_v23 = vpop.eup %2565  ;;  %v1492_v19 = vadd.s32 3, %v1488_v44  ;;  %v1384_v9 = vsel %vm1296_vm6, 0, %v1382_v0 }
 0x2a3   : > { %v1188_v61 = vsel %vm1186_vm10, %v1187_v5, %v2564_v38  ;;  %v2312_v50 = vmin.u32 %v1361_v56, %v1359_v51  ;;  %v1288_v63 = vxor.u32 2147483648, %v2566_v23  ;;  %v1292_v1 = vsel %vm1290_vm12, %v1291_v7, %v2566_v23 }
 0x2a4   : > { %v1185_v15 = vsel %vm1183_vm11, %v2562_v52, %v1184_v31  ;;  %v1484_v59 = vsel %vm1401_vm3, %v1483_v58, %v1482_v28  ;;  %v1493_v40 = vand.u32 3, %v1492_v19  ;;  %v1388_v30 = vadd.s32 3, %v1384_v9 }
 0x2a5   : > { %v1189_v17 = vsel %vm1182_vm9, %v1185_v15, %v1188_v61  ;;  %v1363_v4 = vclz %v2312_v50  ;;  %v1289_v57 = vsel %vm1287_vm15, %v2560_v24, %v1288_v63  ;;  %v1487_v11 = vsel %vm3395_vm4, %v3136_v45, %v1484_v59 }
 0x2a6   : > { %v1190_v33 = vsel %vm1179_vm14, nan, %v1189_v17  ;;  %v1293_v36 = vsel %vm1286_vm0, %v1289_v57, %v1292_v1  ;;  %2567 = vcosq.f32 %v1487_v11  ;;  %vm1495_vm7 = vcmp.eq.s32.totalorder %v1493_v40, 0  ;;  %v2320_v1 = vld [vmem:[%s3752_s4 + $0x28] sm:$0xff]  ;;  %v2321_v17 = vld [vmem:[%s3752_s4 + $0x30] sm:$0xff] }
 0x2a7   : > { %v2313_v18 = vadd.s32 4294967294, %v1363_v4  ;;  %v1294_v48 = vsel %vm1283_vm1, nan, %v1293_v36  ;;  %2569 = vsinq.f32 %v1487_v11  ;;  %vm1498_vm8 = vcmp.eq.s32.totalorder %v1493_v40, 2  ;;  %v1612_v4 = vpop.permute.xlu0 %1611 }
 0x2a8   : > { %v2427_v26 = vpack.c.bf16 %v1294_v48, %v1190_v33  ;;  %v1389_v7 = vand.u32 3, %v1388_v30  ;;  %vm1494_vm9 = vcmp.lt.s32.totalorder %v1493_v40, 2  ;;  %vm1491_vm12 = vweird.f32 %v3136_v45  ;;  %v2322_v45 = vld [vmem:[%s3752_s4 + $0x38] sm:$0xff] }
 0x2a9   : > { %vm2314_vm2 = vcmp.lt.s32.totalorder %v2313_v18, 0  ;;  %vm1387_vm15 = vweird.f32 %v3140_v10  ;;  %v2640_v57 = vmov 0.0|0.0  }
 0x2aa   : > { %v1366_v49 = vsel %vm2314_vm2, 0, %v2313_v18  ;;  %2428 = vmatprep.subr.bf16.mxu0 %v2427_v26  ;;  %vm1394_vm10 = vcmp.eq.s32.totalorder %v1389_v7, 2  ;;  %vm1391_vm11 = vcmp.eq.s32.totalorder %v1389_v7, 0  ;;  %vm1390_vm14 = vcmp.lt.s32.totalorder %v1389_v7, 2  ;;  %2435 = vmatprep.subr.bf16.mxu1 %v2640_v57 }
 0x2ab   : > { %v1367_v35 = vsub.s32 32, %v1366_v49  ;;  %v1371_v3 = vsub.s32 4294967266, %v1366_v49  ;;  %2430 = vmatpush3.bf16.msra.mxu0 %v2427_v26  ;;  %v1368_v53 = vshll.u32 %v1359_v51, %v1366_v49  ;;  %v1640_v36 = vpop.permute.xlu0 %1639 }
 0x2ad   : > { %v1369_v29 = vshrl.u32 %v1351_v42, %v1367_v35  ;;  %v1372_v62 = vadd.s32 127, %v1371_v3 }
 0x2af   : > { %v1370_v41 = vor.u32 %v1369_v29, %v1368_v53  ;;  %v1373_v54 = vshll.u32 %v1372_v62, 23  ;;  %v1622_v42 = vpop.permute.xlu0 %1621 }
 0x2b0   : > { %v2568_v55 = vpop.eup %2567 }
 0x2b1   : > { %v1374_v8 = vor.u32 4788187, %v1373_v54  ;;  %v1377_v60 = vcvt.s32.f32 %v1370_v41  ;;  %v2570_v46 = vpop.eup %2569  ;;  %v1499_v51 = vxor.u32 2147483648, %v2568_v55 }
 0x2b2   : > { %v1496_v52 = vxor.u32 2147483648, %v2570_v46 }
 0x2b3   : > { %v1375_v2 = vand.u32 2147483647, %v1374_v8  ;;  %v1500_v47 = vsel %vm1498_vm8, %v1499_v51, %v2570_v46  ;;  %v1650_v44 = vpop.permute.xlu0 %1649 }
 0x2b4   : > { %v1497_v38 = vsel %vm1495_vm7, %v2568_v55, %v1496_v52 }
 0x2b5   : > { %v1378_v6 = vmul.f32 %v1377_v60, %v1375_v2  ;;  %v1501_v56 = vsel %vm1494_vm9, %v1497_v38, %v1500_v47 }
 0x2b6   : > { %v1502_v61 = vsel %vm1491_vm12, nan, %v1501_v56 }
 0x2b7   : > { %v1379_v25 = vxor.u32 2147483648, %v1378_v6 }
 0x2b9   : > { %v1380_v34 = vsel %vm1297_vm5, %v1379_v25, %v1378_v6 }
 0x2ba   : > { %v1383_v24 = vsel %vm1296_vm6, %v3140_v10, %v1380_v34  ;;  %v1617_v10 = vpop.permute.xlu1 %1616 }
 0x2bb   : > { %2571 = vcosq.f32 %v1383_v24 }
 0x2bc   : > { %2573 = vsinq.f32 %v1383_v24 }
 0x2be   : > { %v1645_v33 = vpop.permute.xlu1 %1644 }
 0x2c2   : > { %v1627_v58 = vpop.permute.xlu1 %1626 }
 0x2c5   : > { %v2572_v13 = vpop.eup %2571 }
 0x2c6   : > { %v2574_v14 = vpop.eup %2573  ;;  %v1395_v5 = vxor.u32 2147483648, %v2572_v13  ;;  %v1655_v11 = vpop.permute.xlu1 %1654 }
 0x2c7   : > { %v1392_v31 = vxor.u32 2147483648, %v2574_v14 }
 0x2c8   : > { %v1396_v23 = vsel %vm1394_vm10, %v1395_v5, %v2574_v14 }
 0x2c9   : > { %v1393_v28 = vsel %vm1391_vm11, %v2572_v13, %v1392_v31 }
 0x2ca   : > { %v1397_v50 = vsel %vm1390_vm14, %v1393_v28, %v1396_v23 }
 0x2cb   : > { %v1398_v15 = vsel %vm1387_vm15, nan, %v1397_v50 }
 0x2cc   : > { %v2431_v63 = vpack.c.bf16 %v1502_v61, %v1398_v15 }
 0x2ce   : > { %2432 = vmatprep.subr.bf16.mxu0 %v2431_v63 }
 0x2cf   : > { %2434 = vmatpush3.bf16.msra.mxu0 %v2431_v63 }
 0x2d2   : > { %2403 = vmatmul.mubr.msk.f32.vlgmr.msra.gmra.mrb[4].mxu0 %vm933_vm13, %v2320_v1 }
 0x2d3   : > { %2405 = vmatprep.mubr.msk.f32.mxu0 %vm933_vm13, %v2321_v17 }
 0x2d6   : > { %2406 = vmatmul.mubr.msk.f32.gmra.mrb[6].mxu0 %vm933_vm13, %v2322_v45 }
 0x3a5   : > { %v2404_v18 = vpop.f32.mrb[4].mxu0 }
 0x3a6   : > { %v1630_v48 = vmul.f32 %v2404_v18, %v1617_v10  ;;  %v1586_v26 = vpop.f32.mrb[5].mxu0 }
 0x3a7   : > { %v1629_v49 = vmul.f32 %v1612_v4, %v1586_v26 }
 0x3a8   : > { %v3429_v59 = vadd.f32 %v1645_v33, %v1630_v48 }
 0x3a9   : > { %v3431_v35 = vadd.f32 %v1640_v36, %v1629_v49  ;;  %v2407_v3 = vpop.f32.mrb[6].mxu0 }
 0x3aa   : > { %v1765_v53 = vand.u32 2147483647, %v3429_v59  ;;  %v1768_v29 = vand.u32 2139095040, %v3429_v59  ;;  %v1632_v62 = vmul.f32 %v2407_v3, %v1627_v58  ;;  %v1596_v20 = vpop.f32.mrb[7].mxu0 }
 0x3ab   : > { %v1661_v41 = vand.u32 2147483647, %v3431_v35  ;;  %v1664_v54 = vand.u32 2139095040, %v3431_v35  ;;  %v1631_v60 = vmul.f32 %v1622_v42, %v1596_v20 }
 0x3ac   : > { %v1769_v21 = vshrl.u32 %v1768_v29, 23  ;;  %v1772_v8 = vand.u32 8388607, %v1765_v53  ;;  %v3439_v2 = vadd.f32 %v1655_v11, %v1632_v62 }
 0x3ad   : > { %v1665_v16 = vshrl.u32 %v1664_v54, 23  ;;  %v1668_v6 = vand.u32 8388607, %v1661_v41  ;;  %v3445_v55 = vadd.f32 %v1650_v44, %v1631_v60 }
 0x3ae   : > { %v2331_v12 = vadd.s32 4294967169, %v1769_v21  ;;  %v1973_v25 = vand.u32 2147483647, %v3439_v2  ;;  %v1976_v0 = vand.u32 2139095040, %v3439_v2  ;;  %v1773_v24 = vor.u32 8388608, %v1772_v8 }
 0x3af   : > { %v2327_v34 = vadd.s32 4294967169, %v1665_v16  ;;  %v1669_v46 = vor.u32 8388608, %v1668_v6  ;;  %v1869_v13 = vand.u32 2147483647, %v3445_v55 }
 0x3b0   : > { %v1775_v19 = vadd.s32 1, %v2331_v12  ;;  %v1977_v40 = vshrl.u32 %v1976_v0, 23  ;;  %v3449_v30 = vand.u32 8388607, %v1973_v25  ;;  %v3452_v14 = vshll.u32 %v1773_v24, 8 }
 0x3b1   : > { %v1671_v9 = vadd.s32 1, %v2327_v34  ;;  %v3456_v56 = vshll.u32 %v1669_v46, 8 }
 0x3b2   : > { %vm1776_vm0 = vcmp.gt.s32.totalorder %v1775_v19, 0  ;;  %v2339_v51 = vadd.s32 4294967169, %v1977_v40  ;;  %v1981_v31 = vor.u32 8388608, %v3449_v30 }
 0x3b3   : > { %v1777_v52 = vsel %vm1776_vm0, %v1775_v19, 0  ;;  %vm1672_vm1 = vcmp.gt.s32.totalorder %v1671_v9, 0 }
 0x3b4   : > { %v1778_v7 = vshrl.u32 %v1777_v52, 5  ;;  %v1779_v38 = vand.u32 31, %v1777_v52  ;;  %v1673_v47 = vsel %vm1672_vm1, %v1671_v9, 0  ;;  %v3460_v50 = vadd.s32 1, %v2339_v51 }
 0x3b5   : > { %v3454_v5 = vshrl.u32 %v1673_v47, 5  ;;  %v1675_v61 = vand.u32 31, %v1673_v47 }
 0x3b6   : > { %v1780_v23 = vsub.s32 32, %v1779_v38  ;;  %v1782_v28 = vshll.u32 %v2637_v37, %v1779_v38  ;;  %v1785_v15 = vshll.u32 %v2638_v39, %v1779_v38  ;;  %v1788_v63 = vshll.u32 %v2639_v43, %v1779_v38 }
 0x3b7   : > { %v1791_v1 = vshll.u32 %v2634_v22, %v1779_v38  ;;  %v1794_v17 = vshll.u32 %v2635_v27, %v1779_v38  ;;  %vm1797_vm2 = vcmp.lt.s32.totalorder %v1778_v7, 1  ;;  %vm1798_vm3 = vcmp.lt.s32.totalorder %v1778_v7, 2 }
 0x3b8   : > { %v1783_v45 = vshrl.u32 %v2638_v39, %v1780_v23  ;;  %v1786_v10 = vshrl.u32 %v2639_v43, %v1780_v23  ;;  %v1789_v4 = vshrl.u32 %v2634_v22, %v1780_v23  ;;  %v1781_v33 = vshrl.u32 %v2637_v37, %v1780_v23 }
 0x3b9   : > { %v1792_v36 = vshrl.u32 %v2635_v27, %v1780_v23  ;;  %v1795_v58 = vshrl.u32 %v2636_v32, %v1780_v23  ;;  %v1676_v49 = vsub.s32 32, %v1675_v61  ;;  %vm1799_vm4 = vcmp.lt.s32.totalorder %v1778_v7, 3 }
 0x3ba   : > { %v1784_v18 = vor.u32 %v1783_v45, %v1782_v28  ;;  %v1787_v48 = vor.u32 %v1786_v10, %v1785_v15  ;;  %v1790_v26 = vor.u32 %v1789_v4, %v1788_v63  ;;  %vm1800_vm5 = vcmp.lt.s32.totalorder %v1778_v7, 4 }
 0x3bb   : > { %v1793_v42 = vor.u32 %v1792_v36, %v1791_v1  ;;  %v1796_v3 = vor.u32 %v1795_v58, %v1794_v17  ;;  %v1678_v60 = vshll.u32 %v2637_v37, %v1675_v61  ;;  %v1679_v12 = vshrl.u32 %v2638_v39, %v1676_v49 }
 0x3bc   : > { %v1801_v29 = vsel %vm1797_vm2, %v1781_v33, %v1784_v18  ;;  %v1802_v62 = vsel %vm1800_vm5, %v1790_v26, 2102212464  ;;  %v1805_v20 = vsel %vm1797_vm2, %v1784_v18, %v1787_v48  ;;  %v1809_v11 = vsel %vm1797_vm2, %v1787_v48, %v1790_v26 }
 0x3bd   : > { %v1803_v54 = vsel %vm1799_vm4, %v1787_v48, %v1802_v62  ;;  %v1806_v21 = vsel %vm1800_vm5, %v1793_v42, 920167782  ;;  %v1810_v8 = vsel %vm1800_vm5, %v1796_v3, 1326507024  ;;  %v1681_v44 = vshll.u32 %v2638_v39, %v1675_v61 }
 0x3be   : > { %v1807_v16 = vsel %vm1799_vm4, %v1790_v26, %v1806_v21  ;;  %v1811_v6 = vsel %vm1799_vm4, %v1793_v42, %v1810_v8  ;;  %v1804_v34 = vsel %vm1798_vm3, %v1801_v29, %v1803_v54  ;;  %v1682_v19 = vshrl.u32 %v2639_v43, %v1676_v49 }
 0x3bf   : > { %v1808_v0 = vsel %vm1798_vm3, %v1805_v20, %v1807_v16  ;;  %v1812_v24 = vsel %vm1798_vm3, %v1809_v11, %v1811_v6  ;;  %v1680_v51 = vor.u32 %v1679_v12, %v1678_v60  ;;  %v1684_v47 = vshll.u32 %v2639_v43, %v1675_v61 }
 0x3c0   : > { %v3483_v46 = vmul.u32.u64.low %v3452_v14, %v1812_v24  ;;  %v3484_v9 = vmul.u32.u64.high %v3452_v14, %v1812_v24, %v3483_v46  ;;  %v3487_v40 = vmul.u32.u64.low %v3452_v14, %v1808_v0  ;;  %v3488_v52 = vmul.u32.u64.high %v3452_v14, %v1808_v0, %v3487_v40 }
 0x3c1   : > { %v1683_v38 = vor.u32 %v1682_v19, %v1681_v44  ;;  %v1685_v23 = vshrl.u32 %v2634_v22, %v1676_v49  ;;  %v1677_v7 = vshrl.u32 %v2637_v37, %v1676_v49  ;;  %v1687_v28 = vshll.u32 %v2634_v22, %v1675_v61 }
 0x3c2   : > { %v1688_v15 = vshrl.u32 %v2635_v27, %v1676_v49  ;;  %v1691_v63 = vshrl.u32 %v2636_v32, %v1676_v49  ;;  %v1820_v1 = vmul.u32 %v3452_v14, %v1804_v34  ;;  %v1690_v45 = vshll.u32 %v2635_v27, %v1675_v61 }
 0x3c3   : > { %v1686_v17 = vor.u32 %v1685_v23, %v1684_v47  ;;  %vm1693_vm6 = vcmp.lt.s32.totalorder %v3454_v5, 1  ;;  %vm1822_vm7 = vc.u32 %v3484_v9, %v3487_v40  ;;  %v1823_v10 = vadd.s32 1, %v3488_v52 }
 0x3c4   : > { %v1689_v4 = vor.u32 %v1688_v15, %v1687_v28  ;;  %vm1694_vm8 = vcmp.lt.s32.totalorder %v3454_v5, 2  ;;  %v1692_v33 = vor.u32 %v1691_v63, %v1690_v45  ;;  %vm1695_vm9 = vcmp.lt.s32.totalorder %v3454_v5, 3 }
 0x3c5   : > { %vm1696_vm10 = vcmp.lt.s32.totalorder %v3454_v5, 4  ;;  %v1701_v36 = vsel %vm1693_vm6, %v1680_v51, %v1683_v38  ;;  %v1824_v14 = vsel %vm1822_vm7, %v1823_v10, %v3488_v52  ;;  %v1705_v18 = vsel %vm1693_vm6, %v1683_v38, %v1686_v17 }
 0x3c6   : > { %v1698_v58 = vsel %vm1696_vm10, %v1686_v17, 2102212464  ;;  %v1702_v61 = vsel %vm1696_vm10, %v1689_v4, 920167782  ;;  %v1825_v48 = vadd.s32 %v1824_v14, %v1820_v1  ;;  %v1697_v26 = vsel %vm1693_vm6, %v1677_v7, %v1680_v51 }
 0x3c7   : > { %v1703_v49 = vsel %vm1695_vm9, %v1686_v17, %v1702_v61  ;;  %v1706_v42 = vsel %vm1696_vm10, %v1692_v33, 1326507024  ;;  %v1699_v3 = vsel %vm1695_vm9, %v1683_v38, %v1698_v58  ;;  %vm1984_vm11 = vcmp.gt.s32.totalorder %v3460_v50, 0 }
 0x3c8   : > { %v1704_v29 = vsel %vm1694_vm8, %v1701_v36, %v1703_v49  ;;  %v1707_v62 = vsel %vm1695_vm9, %v1689_v4, %v1706_v42  ;;  %v1826_v20 = vadd.s32 536870912, %v1825_v48  ;;  %v1985_v16 = vsel %vm1984_vm11, %v3460_v50, 0 }
 0x3c9   : > { %v1708_v11 = vsel %vm1694_vm8, %v1705_v18, %v1707_v62  ;;  %v3513_v54 = vmul.u32.u64.low %v3456_v56, %v1704_v29  ;;  %v3514_v21 = vmul.u32.u64.high %v3456_v56, %v1704_v29, %v3513_v54  ;;  %v1872_v6 = vand.u32 2139095040, %v3445_v55 }
 0x3ca   : > { %v3518_v8 = vmul.u32.u64.low %v3456_v56, %v1708_v11  ;;  %v3519_v60 = vmul.u32.u64.high %v3456_v56, %v1708_v11, %v3518_v8  ;;  %v3523_v12 = vshrl.u32 %v1826_v20, 30  ;;  %v1700_v44 = vsel %vm1694_vm8, %v1697_v26, %v1699_v3 }
 0x3cb   : > { %v1987_v34 = vand.u32 31, %v1985_v16  ;;  %v3529_v0 = vand.u32 8388607, %v1869_v13  ;;  %v1719_v19 = vadd.s32 1, %v3514_v21  ;;  %v3535_v50 = vshll.u32 %v1981_v31, 8 }
 0x3cc   : > { %v1828_v24 = vshll.u32 %v3523_v12, 30  ;;  %v1716_v52 = vmul.u32 %v3456_v56, %v1700_v44  ;;  %vm1718_vm12 = vc.u32 %v3519_v60, %v3513_v54  ;;  %v3540_v5 = vshrl.u32 %v1985_v16, 5 }
 0x3cd   : > { %v1988_v46 = vsub.s32 32, %v1987_v34  ;;  %v1873_v51 = vshrl.u32 %v1872_v6, 23  ;;  %v1720_v47 = vsel %vm1718_vm12, %v1719_v19, %v3514_v21  ;;  %v1990_v23 = vshll.u32 %v2637_v37, %v1987_v34 }
 0x3ce   : > { %v3542_v38 = vsub.s32 %v1825_v48, %v1828_v24  ;;  %v1993_v7 = vshll.u32 %v2638_v39, %v1987_v34  ;;  %v1721_v28 = vadd.s32 %v1720_v47, %v1716_v52  ;;  %v1996_v56 = vshll.u32 %v2639_v43, %v1987_v34 }
 0x3cf   : > { %v1991_v30 = vshrl.u32 %v2638_v39, %v1988_v46  ;;  %v1994_v31 = vshrl.u32 %v2639_v43, %v1988_v46  ;;  %v1997_v63 = vshrl.u32 %v2634_v22, %v1988_v46  ;;  %v1999_v1 = vshll.u32 %v2634_v22, %v1987_v34 }
 0x3d0   : > { %v1831_v15 = vsub.s32 0, %v3542_v38  ;;  %v2000_v17 = vshrl.u32 %v2635_v27, %v1988_v46  ;;  %v1722_v45 = vadd.s32 536870912, %v1721_v28  ;;  %v2002_v33 = vshll.u32 %v2635_v27, %v1987_v34 }
 0x3d1   : > { %v1992_v10 = vor.u32 %v1991_v30, %v1990_v23  ;;  %v1995_v4 = vor.u32 %v1994_v31, %v1993_v7  ;;  %v1998_v14 = vor.u32 %v1997_v63, %v1996_v56  ;;  %v2003_v61 = vshrl.u32 %v2636_v32, %v1988_v46 }
 0x3d2   : > { %v2332_v36 = vmin.u32 %v1831_v15, %v3542_v38  ;;  %v2001_v58 = vor.u32 %v2000_v17, %v1999_v1  ;;  %v1821_v18 = vadd.s32 %v3487_v40, %v3484_v9  ;;  %v1851_v48 = vsub.s32 4, %v3523_v12 }
 0x3d3   : > { %v3560_v26 = vshrl.u32 %v1722_v45, 30  ;;  %v2335_v49 = vadd.s32 4294967169, %v1873_v51  ;;  %v2004_v3 = vor.u32 %v2003_v61, %v2002_v33  ;;  %vm2005_vm14 = vcmp.lt.s32.totalorder %v3540_v5, 1 }
 0x3d4   : > { %v1833_v42 = vclz %v2332_v36  ;;  %vm2008_vm15 = vcmp.lt.s32.totalorder %v3540_v5, 4  ;;  %v1989_v62 = vshrl.u32 %v2637_v37, %v1988_v46  ;;  %v2013_v11 = vsel %vm2005_vm14, %v1992_v10, %v1995_v4 }
 0x3d5   : > { %v1724_v29 = vshll.u32 %v3560_v26, 30  ;;  %v2010_v20 = vsel %vm2008_vm15, %v1998_v14, 2102212464  ;;  %vm2006_vm0 = vcmp.lt.s32.totalorder %v3540_v5, 2  ;;  %vm2007_vm1 = vcmp.lt.s32.totalorder %v3540_v5, 3 }
 0x3d6   : > { %v2333_v9 = vadd.s32 4294967294, %v1833_v42  ;;  %v2014_v40 = vsel %vm2008_vm15, %v2001_v58, 920167782  ;;  %v2009_v8 = vsel %vm2005_vm14, %v1989_v62, %v1992_v10  ;;  %v2017_v6 = vsel %vm2005_vm14, %v1995_v4, %v1998_v14 }
 0x3d7   : > { %v3572_v21 = vsub.s32 %v1721_v28, %v1724_v29  ;;  %v2015_v16 = vsel %vm2007_vm1, %v1998_v14, %v2014_v40  ;;  %v2011_v44 = vsel %vm2007_vm1, %v1995_v4, %v2010_v20  ;;  %v2018_v24 = vsel %vm2008_vm15, %v2004_v3, 1326507024 }
 0x3d8   : > { %vm2334_vm2 = vcmp.lt.s32.totalorder %v2333_v9, 0  ;;  %v2016_v34 = vsel %vm2006_vm0, %v2013_v11, %v2015_v16  ;;  %v2019_v52 = vsel %vm2007_vm1, %v2001_v58, %v2018_v24  ;;  %v1879_v51 = vadd.s32 1, %v2335_v49 }
 0x3d9   : > { %v1836_v19 = vsel %vm2334_vm2, 0, %v2333_v9  ;;  %v1727_v46 = vsub.s32 0, %v3572_v21  ;;  %v2020_v28 = vsel %vm2006_vm0, %v2017_v6, %v2019_v52  ;;  %vm1767_vm4 = vcmp.lt.s32.totalorder %v3429_v59, 0 }
 0x3da   : > { %v1837_v47 = vsub.s32 32, %v1836_v19  ;;  %v1838_v23 = vshll.u32 %v3542_v38, %v1836_v19  ;;  %v1841_v7 = vsub.s32 4294967266, %v1836_v19  ;;  %vm1880_vm3 = vcmp.gt.s32.totalorder %v1879_v51, 0 }
 0x3db   : > { %v2328_v30 = vmin.u32 %v1727_v46, %v3572_v21  ;;  %v3584_v31 = vmul.u32.u64.low %v3535_v50, %v2020_v28  ;;  %v3585_v56 = vmul.u32.u64.high %v3535_v50, %v2020_v28, %v3584_v31  ;;  %v1881_v45 = vsel %vm1880_vm3, %v1879_v51, 0 }
 0x3dc   : > { %v1839_v15 = vshrl.u32 %v1821_v18, %v1837_v47  ;;  %v1842_v63 = vadd.s32 127, %v1841_v7  ;;  %v3588_v1 = vmul.u32.u64.low %v3535_v50, %v2016_v34  ;;  %v3589_v17 = vmul.u32.u64.high %v3535_v50, %v2016_v34, %v3588_v1 }
 0x3dd   : > { %v1729_v38 = vclz %v2328_v30  ;;  %v2012_v33 = vsel %vm2006_vm0, %v2009_v8, %v2011_v44  ;;  %v1883_v36 = vand.u32 31, %v1881_v45  ;;  %v1717_v14 = vadd.s32 %v3513_v54, %v3519_v60 }
 0x3de   : > { %v1840_v10 = vor.u32 %v1839_v15, %v1838_v23  ;;  %v1843_v4 = vshll.u32 %v1842_v63, 23  ;;  %vm2030_vm5 = vc.u32 %v3585_v56, %v3588_v1  ;;  %v1877_v61 = vor.u32 8388608, %v3529_v0 }
 0x3df   : > { %v2329_v58 = vadd.s32 4294967294, %v1729_v38  ;;  %vm3602_vm6 = vcmp.le.f32.partialorder %v1765_v53, 0.7853982  ;;  %v3609_v5 = vsel %vm1767_vm4, %v1851_v48, %v3523_v12  ;;  %v2031_v54 = vadd.s32 1, %v3589_v17 }
 0x3e0   : > { %v1844_v49 = vor.u32 4788187, %v1843_v4  ;;  %v1884_v60 = vsub.s32 32, %v1883_v36  ;;  %v1747_v42 = vsub.s32 4, %v3560_v26  ;;  %v2028_v3 = vmul.u32 %v3535_v50, %v2012_v33 }
 0x3e1   : > { %vm2330_vm7 = vcmp.lt.s32.totalorder %v2329_v58, 0  ;;  %v3614_v29 = vshrl.u32 %v1881_v45, 5  ;;  %v1847_v62 = vcvt.s32.f32 %v1840_v10  ;;  %v2032_v11 = vsel %vm2030_vm5, %v2031_v54, %v3589_v17 }
 0x3e2   : > { %v1845_v53 = vand.u32 2147483647, %v1844_v49  ;;  %v1732_v20 = vsel %vm2330_vm7, 0, %v2329_v58  ;;  %vm1663_vm8 = vcmp.lt.s32.totalorder %v3431_v35, 0  ;;  %v2033_v48 = vadd.s32 %v2032_v11, %v2028_v3 }
 0x3e3   : > { %v1733_v9 = vsub.s32 32, %v1732_v20  ;;  %v1737_v12 = vsub.s32 4294967266, %v1732_v20  ;;  %v1886_v40 = vshll.u32 %v2637_v37, %v1883_v36  ;;  %v1734_v16 = vshll.u32 %v3572_v21, %v1732_v20 }
 0x3e4   : > { %v1848_v8 = vmul.f32 %v1847_v62, %v1845_v53  ;;  %v1887_v6 = vshrl.u32 %v2638_v39, %v1884_v60  ;;  %v1889_v50 = vshll.u32 %v2638_v39, %v1883_v36  ;;  %v2034_v24 = vadd.s32 536870912, %v2033_v48 }
 0x3e5   : > { %v1735_v44 = vshrl.u32 %v1717_v14, %v1733_v9  ;;  %v1738_v34 = vadd.s32 127, %v1737_v12  ;;  %v1890_v19 = vshrl.u32 %v2639_v43, %v1884_v60  ;;  %v1892_v52 = vshll.u32 %v2639_v43, %v1883_v36 }
 0x3e6   : > { %v1849_v46 = vxor.u32 2147483648, %v1848_v8  ;;  %v1893_v51 = vshrl.u32 %v2634_v22, %v1884_v60  ;;  %v1895_v47 = vshll.u32 %v2634_v22, %v1883_v36  ;;  %v3626_v28 = vshrl.u32 %v2034_v24, 30 }
 0x3e7   : > { %v1736_v23 = vor.u32 %v1735_v44, %v1734_v16  ;;  %v1739_v7 = vshll.u32 %v1738_v34, 23  ;;  %v1896_v21 = vshrl.u32 %v2635_v27, %v1884_v60  ;;  %v1888_v30 = vor.u32 %v1887_v6, %v1886_v40 }
 0x3e8   : > { %v1850_v39 = vsel %vm1767_vm4, %v1849_v46, %v1848_v8  ;;  %v1898_v31 = vshll.u32 %v2635_v27, %v1883_v36  ;;  %v1899_v15 = vshrl.u32 %v2636_v32, %v1884_v60  ;;  %vm3638_vm9 = vcmp.le.f32.partialorder %v1661_v41, 0.7853982 }
 0x3e9   : > { %v1853_v43 = vsel %vm3602_vm6, %v3429_v59, %v1850_v39  ;;  %v1740_v63 = vor.u32 4788187, %v1739_v7  ;;  %v2036_v17 = vshll.u32 %v3626_v28, 30  ;;  %v1891_v38 = vor.u32 %v1890_v19, %v1889_v50 }
 0x3ea   : > { %2575 = vcosq.f32 %v1853_v43  ;;  %v1894_v45 = vor.u32 %v1893_v51, %v1892_v52  ;;  %v1897_v10 = vor.u32 %v1896_v21, %v1895_v47  ;;  %v1900_v27 = vor.u32 %v1899_v15, %v1898_v31 }
 0x3eb   : > { %2577 = vsinq.f32 %v1853_v43  ;;  %v1741_v32 = vand.u32 2147483647, %v1740_v63  ;;  %v1743_v4 = vcvt.s32.f32 %v1736_v23  ;;  %v3643_v33 = vsub.s32 %v2033_v48, %v2036_v17 }
 0x3ec   : > { %v1748_v41 = vsel %vm1663_vm8, %v1747_v42, %v3560_v26  ;;  %v1885_v36 = vshrl.u32 %v2637_v37, %v1884_v60  ;;  %vm1901_vm10 = vcmp.lt.s32.totalorder %v3614_v29, 1  ;;  %vm1902_vm11 = vcmp.lt.s32.totalorder %v3614_v29, 2 }
 0x3ed   : > { %v1744_v14 = vmul.f32 %v1743_v4, %v1741_v32  ;;  %v2039_v58 = vsub.s32 0, %v3643_v33  ;;  %vm1904_vm12 = vcmp.lt.s32.totalorder %v3614_v29, 4  ;;  %v1909_v49 = vsel %vm1901_vm10, %v1888_v30, %v1891_v38 }
 0x3ee   : > { %vm1903_vm14 = vcmp.lt.s32.totalorder %v3614_v29, 3  ;;  %v1910_v54 = vsel %vm1904_vm12, %v1897_v10, 920167782  ;;  %v1913_v3 = vsel %vm1901_vm10, %v1891_v38, %v1894_v45  ;;  %v1914_v53 = vsel %vm1904_vm12, %v1900_v27, 1326507024 }
 0x3ef   : > { %v1745_v62 = vxor.u32 2147483648, %v1744_v14  ;;  %v2340_v26 = vmin.u32 %v2039_v58, %v3643_v33  ;;  %v1906_v42 = vsel %vm1904_vm12, %v1894_v45, 2102212464  ;;  %v1911_v37 = vsel %vm1903_vm14, %v1894_v45, %v1910_v54 }
 0x3f0   : > { %v1905_v60 = vsel %vm1901_vm10, %v1885_v36, %v1888_v30  ;;  %v1912_v20 = vsel %vm1902_vm11, %v1909_v49, %v1911_v37  ;;  %v1915_v11 = vsel %vm1903_vm14, %v1897_v10, %v1914_v53  ;;  %v1917_v9 = vshll.u32 %v1877_v61, 8 }
 0x3f1   : > { %v1746_v12 = vsel %vm1663_vm8, %v1745_v62, %v1744_v14  ;;  %v2041_v48 = vclz %v2340_v26  ;;  %v1916_v40 = vsel %vm1902_vm11, %v1913_v3, %v1915_v11  ;;  %v1854_v8 = vsel %vm3602_vm6, 0, %v3609_v5 }
 0x3f2   : > { %v1749_v16 = vsel %vm3638_vm9, %v3431_v35, %v1746_v12  ;;  %v1907_v6 = vsel %vm1903_vm14, %v1891_v38, %v1906_v42  ;;  %v3675_v0 = vmul.u32.u64.low %v1917_v9, %v1916_v40  ;;  %v3676_v61 = vmul.u32.u64.high %v1917_v9, %v1916_v40, %v3675_v0 }
 0x3f3   : > { %2579 = vcosq.f32 %v1749_v16  ;;  %v2341_v50 = vadd.s32 4294967294, %v2041_v48  ;;  %v3678_v44 = vmul.u32.u64.low %v1917_v9, %v1912_v20  ;;  %v3679_v34 = vmul.u32.u64.high %v1917_v9, %v1912_v20, %v3678_v44 }
 0x3f4   : > { %v2576_v24 = vpop.eup %2575  ;;  %2581 = vsinq.f32 %v1749_v16  ;;  %v1750_v18 = vsel %vm3638_vm9, 0, %v1748_v41  ;;  %v1858_v5 = vadd.s32 3, %v1854_v8  ;;  %v1908_v46 = vsel %vm1902_vm11, %v1905_v60, %v1907_v6 }
 0x3f5   : > { %v2578_v19 = vpop.eup %2577  ;;  %vm2342_vm15 = vcmp.lt.s32.totalorder %v2341_v50, 0  ;;  %v1865_v52 = vxor.u32 2147483648, %v2576_v24  ;;  %vm1926_vm0 = vc.u32 %v3676_v61, %v3678_v44  ;;  %vm1857_vm1 = vweird.f32 %v3429_v59 }
 0x3f6   : > { %v2044_v51 = vsel %vm2342_vm15, 0, %v2341_v50  ;;  %v1859_v47 = vand.u32 3, %v1858_v5  ;;  %v2029_v23 = vadd.s32 %v3588_v1, %v3585_v56  ;;  %v1927_v21 = vadd.s32 1, %v3679_v34 }
 0x3f7   : > { %v2049_v7 = vsub.s32 4294967266, %v2044_v51  ;;  %v1754_v39 = vadd.s32 3, %v1750_v18  ;;  %v2045_v30 = vsub.s32 32, %v2044_v51  ;;  %v1924_v31 = vmul.u32 %v1917_v9, %v1908_v46 }
 0x3f8   : > { %v1862_v15 = vxor.u32 2147483648, %v2578_v19  ;;  %vm1864_vm2 = vcmp.eq.s32.totalorder %v1859_v47, 2  ;;  %v1928_v43 = vsel %vm1926_vm0, %v1927_v21, %v3679_v34  ;;  %vm1861_vm3 = vcmp.eq.s32.totalorder %v1859_v47, 0 }
 0x3f9   : > { %v2050_v29 = vadd.s32 127, %v2049_v7  ;;  %v1866_v22 = vsel %vm1864_vm2, %v1865_v52, %v2578_v19  ;;  %v1929_v63 = vadd.s32 %v1928_v43, %v1924_v31  ;;  %vm1860_vm4 = vcmp.lt.s32.totalorder %v1859_v47, 2 }
 0x3fa   : > { %v1863_v17 = vsel %vm1861_vm3, %v2576_v24, %v1862_v15  ;;  %v1755_v45 = vand.u32 3, %v1754_v39  ;;  %v2047_v56 = vshrl.u32 %v2029_v23, %v2045_v30  ;;  %vm2641_vm5 = vmmov 0  }
 0x3fb   : > { %v2051_v38 = vshll.u32 %v2050_v29, 23  ;;  %v1867_v10 = vsel %vm1860_vm4, %v1863_v17, %v1866_v22  ;;  %v1930_v1 = vadd.s32 536870912, %v1929_v63  ;;  %v2642_v32 = vmov 0.0  }
 0x3fc   : > { %v1868_v27 = vsel %vm1857_vm1, nan, %v1867_v10  ;;  %2416 = vmatprep.mubr.msk.f32.mxu1 %vm2641_vm5, %v2642_v32  ;;  %v2046_v36 = vshll.u32 %v3643_v33, %v2044_v51  ;;  %vm1760_vm6 = vcmp.eq.s32.totalorder %v1755_v45, 2  ;;  %vm1757_vm7 = vcmp.eq.s32.totalorder %v1755_v45, 0 }
 0x3fd   : > { %v2580_v4 = vpop.eup %2579  ;;  %v2052_v14 = vor.u32 4788187, %v2051_v38  ;;  %v1931_v58 = vshrl.u32 %v1930_v1, 30  ;;  %vm1756_vm8 = vcmp.lt.s32.totalorder %v1755_v45, 2  ;;  %vm1753_vm9 = vweird.f32 %v3431_v35 }
 0x3fe   : > { %v2582_v41 = vpop.eup %2581  ;;  %v1761_v49 = vxor.u32 2147483648, %v2580_v4  ;;  %v2048_v3 = vor.u32 %v2047_v56, %v2046_v36  ;;  %vm1975_vm11 = vcmp.lt.s32.totalorder %v3439_v2, 0  ;;  %v1925_v6 = vadd.s32 %v3678_v44, %v3676_v61 }
 0x3ff   : > { %v1758_v54 = vxor.u32 2147483648, %v2582_v41  ;;  %v1932_v53 = vshll.u32 %v1931_v58, 30  ;;  %v2053_v59 = vand.u32 2147483647, %v2052_v14  ;;  %vm3705_vm12 = vcmp.le.f32.partialorder %v1973_v25, 0.7853982 }
 0x400   : > { %v1762_v62 = vsel %vm1760_vm6, %v1761_v49, %v2582_v41  ;;  %v2055_v20 = vcvt.s32.f32 %v2048_v3  ;;  %v2059_v52 = vsub.s32 4, %v3626_v28  ;;  %v1955_v23 = vsub.s32 4, %v1931_v58  ;;  %v2077_v3 = vld [vmem:[%s3753_s5] sm:$0x7] }
 0x401   : > { %v1759_v26 = vsel %vm1757_vm7, %v2580_v4, %v1758_v54  ;;  %v1933_v42 = vsub.s32 %v1929_v63, %v1932_v53  ;;  %vm1871_vm14 = vcmp.lt.s32.totalorder %v3445_v55, 0  ;;  %vm1870_vm15 = vcmp.le.f32.partialorder %v1869_v13, 0.7853982  ;;  %v2082_v53 = vpop.permute.xlu0 %2081 }
 0x402   : > { %v1763_v37 = vsel %vm1756_vm8, %v1759_v26, %v1762_v62  ;;  %v2056_v9 = vmul.f32 %v2055_v20, %v2053_v59  ;;  %v2060_v25 = vsel %vm1975_vm11, %v2059_v52, %v3626_v28  ;;  %v1956_v30 = vsel %vm1871_vm14, %v1955_v23, %v1931_v58 }
 0x403   : > { %v1764_v60 = vsel %vm1753_vm9, nan, %v1763_v37  ;;  %v1935_v11 = vsub.s32 0, %v1933_v42  ;;  %v2062_v21 = vsel %vm3705_vm12, 0, %v2060_v25  ;;  %v1958_v28 = vsel %vm1870_vm15, 0, %v1956_v30 }
 0x404   : > { %v2436_v33 = vpack.c.bf16 %v1868_v27, %v1764_v60  ;;  %v2057_v40 = vxor.u32 2147483648, %v2056_v9  ;;  %v2066_v15 = vadd.s32 3, %v2062_v21  ;;  %v1962_v63 = vadd.s32 3, %v1958_v28 }
 0x405   : > { %v2336_v12 = vmin.u32 %v1935_v11, %v1933_v42  ;;  %vm2065_vm5 = vweird.f32 %v3439_v2  ;;  %vm1961_vm7 = vweird.f32 %v3445_v55 }
 0x406   : > { %2437 = vmatpush3.bf16.msra.mxu1 %v2436_v33  ;;  %v2058_v35 = vsel %vm1975_vm11, %v2057_v40, %v2056_v9  ;;  %v2067_v22 = vand.u32 3, %v2066_v15  ;;  %v1963_v45 = vand.u32 3, %v1962_v63 }
 0x407   : > { %2438 = vmatprep.subr.bf16.mxu1 %v2640_v57  ;;  %v1937_v48 = vclz %v2336_v12  ;;  %v2061_v5 = vsel %vm3705_vm12, %v3439_v2, %v2058_v35 }
 0x408   : > { %2583 = vcosq.f32 %v2061_v5  ;;  %vm2069_vm0 = vcmp.eq.s32.totalorder %v2067_v22, 0  ;;  %vm2072_vm1 = vcmp.eq.s32.totalorder %v2067_v22, 2  ;;  %vm2068_vm2 = vcmp.lt.s32.totalorder %v2067_v22, 2 }
 0x409   : > { %v2337_v8 = vadd.s32 4294967294, %v1937_v48  ;;  %2585 = vsinq.f32 %v2061_v5  ;;  %vm1968_vm3 = vcmp.eq.s32.totalorder %v1963_v45, 2  ;;  %vm1965_vm4 = vcmp.eq.s32.totalorder %v1963_v45, 0 }
 0x40a   : > { %vm1964_vm6 = vcmp.lt.s32.totalorder %v1963_v45, 2 }
 0x40b   : > { %vm2338_vm10 = vcmp.lt.s32.totalorder %v2337_v8, 0 }
 0x40c   : > { %v1940_v16 = vsel %vm2338_vm10, 0, %v2337_v8 }
 0x40d   : > { %v1941_v0 = vsub.s32 32, %v1940_v16  ;;  %v1945_v50 = vsub.s32 4294967266, %v1940_v16  ;;  %v1942_v57 = vshll.u32 %v1933_v42, %v1940_v16 }
 0x40f   : > { %v1943_v24 = vshrl.u32 %v1925_v6, %v1941_v0  ;;  %v1946_v18 = vadd.s32 127, %v1945_v50 }
 0x411   : > { %v1944_v19 = vor.u32 %v1943_v24, %v1942_v57  ;;  %v1947_v46 = vshll.u32 %v1946_v18, 23 }
 0x412   : > { %v2584_v29 = vpop.eup %2583 }
 0x413   : > { %v1948_v61 = vor.u32 4788187, %v1947_v46  ;;  %v1951_v51 = vcvt.s32.f32 %v1944_v19  ;;  %v2586_v43 = vpop.eup %2585  ;;  %v2073_v38 = vxor.u32 2147483648, %v2584_v29 }
 0x414   : > { %v2070_v17 = vxor.u32 2147483648, %v2586_v43 }
 0x415   : > { %v1949_v44 = vand.u32 2147483647, %v1948_v61  ;;  %v2074_v56 = vsel %vm2072_vm1, %v2073_v38, %v2586_v43 }
 0x416   : > { %v2071_v10 = vsel %vm2069_vm0, %v2584_v29, %v2070_v17 }
 0x417   : > { %v1952_v47 = vmul.f32 %v1951_v51, %v1949_v44  ;;  %v2075_v32 = vsel %vm2068_vm2, %v2071_v10, %v2074_v56 }
 0x418   : > { %v2076_v14 = vsel %vm2065_vm5, nan, %v2075_v32 }
 0x419   : > { %v1953_v7 = vxor.u32 2147483648, %v1952_v47 }
 0x41b   : > { %v1954_v39 = vsel %vm1871_vm14, %v1953_v7, %v1952_v47 }
 0x41c   : > { %v1957_v31 = vsel %vm1870_vm15, %v3445_v55, %v1954_v39 }
 0x41d   : > { %2587 = vcosq.f32 %v1957_v31 }
 0x41e   : > { %2589 = vsinq.f32 %v1957_v31 }
 0x427   : > { %v2588_v13 = vpop.eup %2587 }
 0x428   : > { %v2590_v1 = vpop.eup %2589  ;;  %v1969_v27 = vxor.u32 2147483648, %v2588_v13 }
 0x429   : > { %v1966_v4 = vxor.u32 2147483648, %v2590_v1 }
 0x42a   : > { %v1970_v41 = vsel %vm1968_vm3, %v1969_v27, %v2590_v1 }
 0x42b   : > { %v1967_v36 = vsel %vm1965_vm4, %v2588_v13, %v1966_v4 }
 0x42c   : > { %v1971_v58 = vsel %vm1964_vm6, %v1967_v36, %v1970_v41 }
 0x42d   : > { %v1972_v49 = vsel %vm1961_vm7, nan, %v1971_v58 }
 0x42e   : > { %v2439_v54 = vpack.c.bf16 %v2076_v14, %v1972_v49 }
 0x430   : > { %2440 = vmatpush3.bf16.msra.mxu1 %v2439_v54 }
 0x433   : > { %2417 = vmatmul.mubr.msk.f32.vlgmr.msra.gmra.mrb[4].mxu1 %vm933_vm13, %v2077_v3 }
 0x506   : > { %v2153_v62 = vpop.f32.mrb[4].mxu1 }
 0x507   : > { %v2154_v26 = vadd.f32 %v2153_v62, %v2082_v53  ;;  %v2418_v2 = vpop.f32.mrb[5].mxu1 }
 0x509   : > { %2591 = vtanh.f32 %v2154_v26 }
 0x513   : > { %v2592_v55 = vpop.eup %2591 }
 0x514   : > { %2158 = vst [vmem:[%s349_s19] sm:$0x7] %v2592_v55 }
 0x515 PF: > { %s17_s28 = sadd.s32 1, %s2631_s28   ;;  %s3774_s24 = smov %s2623_s26 }
 0x516   : > { %p14_p7 = scmp.ge.s32.totalorder %s17_s28, 8   ;;  %s3775_s25 = smov %s2627_s27 }
 0x517   : > { %s3776_s26 = smov %s3779_s29  ;;  %s3777_s27 = smov %s3783_s30 }
 0x518   :  { %16 = sbr.rel (!%p14_p7) target bundleno = 3 (0x3), region = 85 }

</bundles_post_ra>
